<compile_context>
chip_gen: v7x
topology: tpu7x:2x2x1
jax: 0.10.0
libtpu: 0.0.40
codegen_flags: <defaults>
</compile_context>

<pallas_src>
import functools

import jax
import jax.numpy as jnp
from jax import lax
from jax.experimental import pallas as pl
from jax.experimental.pallas import tpu as pltpu

EPS = 1e-5  # nn.BatchNorm2d default


def _resnet_block_kernel(x_ref, h_idx_ref, w_idx_ref, w1_ref, w2_ref, o_ref,
                         col_ref, *, H, W):
    # x_ref:     (C, M) f32, channel-major activations, M = N*H*W (lane dim)
    # h_idx_ref: (C, M) int32, h coordinate of each flat pixel (wrapper-built)
    # w_idx_ref: (C, M) int32, w coordinate of each flat pixel
    # w*_ref:    (Cout, 9*Cin) pre-flattened conv weights (tap-major, ch-minor)
    # o_ref:     (Cout, M)
    # col_ref:   VMEM scratch (9*Cin, M) im2col patches (reused by both convs)
    C, M = x_ref.shape
    h_idx = h_idx_ref[...]
    w_idx = w_idx_ref[...]

    def im2col(act):
        # For tap (dh, dw), the zero-padded shifted image in flat-index space
        # is a single lane roll by -(dh*W + dw) plus a border mask (rolling
        # never crosses an image when (h+dh, w+dw) is in bounds).
        t = 0
        for dh in (-1, 0, 1):
            for dw in (-1, 0, 1):
                delta = dh * W + dw
                shifted = act if delta == 0 else pltpu.roll(
                    act, shift=(-delta) % M, axis=1)
                valid = None
                if dh < 0:
                    valid = h_idx >= -dh
                elif dh > 0:
                    valid = h_idx < H - dh
                if dw < 0:
                    c = w_idx >= -dw
                    valid = c if valid is None else (valid & c)
                elif dw > 0:
                    c = w_idx < W - dw
                    valid = c if valid is None else (valid & c)
                tap = shifted if valid is None else jnp.where(valid, shifted, 0.0)
                col_ref[t * C:(t + 1) * C, :] = tap.astype(col_ref.dtype)
                t += 1

    def conv3x3(act, w_ref):
        im2col(act)
        # One MXU matmul per conv: (Cout, 9C) @ (9C, M) -> (Cout, M), f32 acc.
        return jnp.dot(w_ref[...], col_ref[...],
                       preferred_element_type=jnp.float32)

    inv_m = 1.0 / M

    def batchnorm(y):
        # Training-mode BN over (N,H,W) == lane axis; single pass over y,
        # biased variance, rsqrt on the (otherwise idle) EUP slot.
        s1 = jnp.sum(y, axis=1, keepdims=True)
        s2 = jnp.sum(y * y, axis=1, keepdims=True)
        mean = s1 * inv_m
        var = s2 * inv_m - mean * mean
        return (y - mean) * lax.rsqrt(var + EPS)

    x = x_ref[...]                                              # (C, M) f32
    h1 = jnp.maximum(batchnorm(conv3x3(x, w1_ref)), 0.0)        # conv1->bn1->relu
    h2 = batchnorm(conv3x3(h1, w2_ref))                         # conv2->bn2
    o_ref[...] = jnp.maximum(h2 + x, 0.0).astype(o_ref.dtype)   # +identity, relu


def resnet_block(x_nchw, conv1_w, conv2_w, *, matmul_dtype=jnp.float32):
    """x_nchw: (N,C,H,W); conv*_w: (Cout,Cin,3,3) PyTorch OIHW layout.

    matmul_dtype=jnp.bfloat16 enables the full-rate MXU path on v6e/v7x
    (BN / residual math stays f32); the default keeps f32 operands so the
    1e-4 comparison against the f32 reference holds.
    """
    N, C, H, W = x_nchw.shape
    Cout = conv1_w.shape[0]
    assert C == Cout, "identity residual path requires in_size == out_size"
    M = N * H * W

    # NCHW -> channel-major 2D (C, N*H*W): lane dim = N*H*W (multiple of 128).
    x2d = jnp.transpose(x_nchw, (1, 0, 2, 3)).reshape(C, M).astype(jnp.float32)

    # OIHW -> (Cout, 9*Cin), tap-major / channel-minor, matching im2col rows.
    # Done once in the wrapper (XLA) so the kernel does zero weight reshaping.
    w1 = jnp.transpose(conv1_w, (0, 2, 3, 1)).reshape(Cout, 9 * C).astype(matmul_dtype)
    w2 = jnp.transpose(conv2_w, (0, 2, 3, 1)).reshape(Cout, 9 * Cout).astype(matmul_dtype)

    # Pixel coordinates of every flat (n,h,w) position, precomputed host/XLA
    # side (avoids in-kernel vector integer div/mod).
    flat = jnp.arange(M, dtype=jnp.int32)
    h_idx = jnp.broadcast_to(((flat // W) % H)[None, :], (C, M))
    w_idx = jnp.broadcast_to((flat % W)[None, :], (C, M))

    kernel = functools.partial(_resnet_block_kernel, H=H, W=W)

    # TODO(synk): for production ResNet shapes, add a grid over N (or H with a
    # 1-row halo), dimension_semantics=("parallel", ...) and two-phase BN
    # stats (partial sums combined in scratch/CMEM) so both v7x TensorCores
    # are used and per-step tiles stay inside v7x's 64 MiB VMEM.
    out2d = pl.pallas_call(
        kernel,
        out_shape=jax.ShapeDtypeStruct((Cout, M), x_nchw.dtype),
        in_specs=[pl.BlockSpec(memory_space=pltpu.MemorySpace.VMEM)] * 5,
        out_specs=pl.BlockSpec(memory_space=pltpu.MemorySpace.VMEM),
        scratch_shapes=[pltpu.VMEM((9 * C, M), matmul_dtype)],
        compiler_params=pltpu.CompilerParams(vmem_limit_bytes=32 * 1024 * 1024),
    )(x2d, h_idx, w_idx, w1, w2)

    # (Cout, N*H*W) -> NCHW
    return jnp.transpose(out2d.reshape(Cout, N, H, W), (1, 0, 2, 3))


def reference(x, w1, w2):
    """Pure-JAX reference mirroring the PyTorch forward (training-mode BN)."""
    def conv(y, w):
        return jax.lax.conv_general_dilated(
            y, w, window_strides=(1, 1), padding=((1, 1), (1, 1)),
            dimension_numbers=("NCHW", "OIHW", "NCHW"))

    def bn(y):
        mean = jnp.mean(y, axis=(0, 2, 3), keepdims=True)
        var = jnp.mean((y - mean) ** 2, axis=(0, 2, 3), keepdims=True)
        return (y - mean) / jnp.sqrt(var + EPS)

    h = jax.nn.relu(bn(conv(x, w1)))
    h = bn(conv(h, w2))
    return jax.nn.relu(h + x)


if __name__ == "__main__":
    # ResNetBlock(in_size=16, out_size=16, downsample=False)
    N, C, H, W = 2, 16, 16, 16
    key = jax.random.PRNGKey(0)
    kx, k1, k2 = jax.random.split(key, 3)
    x = jax.random.normal(kx, (N, C, H, W), dtype=jnp.float32)
    conv1_w = jax.random.normal(k1, (C, C, 3, 3), dtype=jnp.float32) * 0.1
    conv2_w = jax.random.normal(k2, (C, C, 3, 3), dtype=jnp.float32) * 0.1

    out = jax.block_until_ready(resnet_block(x, conv1_w, conv2_w))
    ref = jax.block_until_ready(reference(x, conv1_w, conv2_w))

    assert out.shape == (N, C, H, W)
    err = jnp.max(jnp.abs(out - ref))
    assert jnp.allclose(out, ref, rtol=1e-4, atol=1e-4), f"max abs err {err}"

    print("KERNEL_OK")
</pallas_src>

<mosaic_0001>
module attributes {stable_mosaic.version = 11 : i64} {
  func.func @_resnet_block_kernel(%arg0: memref<16x512xf32, #tpu.memory_space<vmem>>, %arg1: memref<16x512xi32, #tpu.memory_space<vmem>>, %arg2: memref<16x512xi32, #tpu.memory_space<vmem>>, %arg3: memref<16x144xf32, #tpu.memory_space<vmem>>, %arg4: memref<16x144xf32, #tpu.memory_space<vmem>>, %arg5: memref<16x512xf32, #tpu.memory_space<vmem>>, %arg6: memref<144x512xf32, #tpu.memory_space<vmem>>) attributes {dimension_semantics = [], scalar_prefetch = 0 : i64, scratch_operands = 1 : i64, tpu.core_type = #tpu.core_type<tc>} {
    %c0 = arith.constant 0 : index
    %c0_0 = arith.constant 0 : index
    %0 = vector.load %arg1[%c0, %c0_0] : memref<16x512xi32, #tpu.memory_space<vmem>>, vector<16x512xi32>
    %c0_1 = arith.constant 0 : index
    %c0_2 = arith.constant 0 : index
    %1 = vector.load %arg2[%c0_1, %c0_2] : memref<16x512xi32, #tpu.memory_space<vmem>>, vector<16x512xi32>
    %c0_3 = arith.constant 0 : index
    %c0_4 = arith.constant 0 : index
    %2 = vector.load %arg0[%c0_3, %c0_4] : memref<16x512xf32, #tpu.memory_space<vmem>>, vector<16x512xf32>
    %c17_i32 = arith.constant 17 : i32
    %3 = tpu.dynamic_rotate %2 by %c17_i32 dim 1 : vector<16x512xf32>, i32 -> vector<16x512xf32>
    %c1_i32 = arith.constant 1 : i32
    %4 = vector.broadcast %c1_i32 : i32 to vector<16x512xi32>
    %5 = arith.cmpi sge, %0, %4 : vector<16x512xi32>
    %c1_i32_5 = arith.constant 1 : i32
    %6 = vector.broadcast %c1_i32_5 : i32 to vector<16x512xi32>
    %7 = arith.cmpi sge, %1, %6 : vector<16x512xi32>
    %8 = arith.andi %5, %7 : vector<16x512xi1>
    %cst = arith.constant 0.000000e+00 : f32
    %9 = vector.broadcast %cst : f32 to vector<16x512xf32>
    %10 = arith.select %8, %3, %9 : vector<16x512xi1>, vector<16x512xf32>
    %c0_6 = arith.constant 0 : index
    %c0_7 = arith.constant 0 : index
    %11 = vector.load %arg6[%c0_6, %c0_7] : memref<144x512xf32, #tpu.memory_space<vmem>>, vector<16x512xf32>
    tpu.vector_store %arg6[%c0_6, %c0_7], %10 {strides = array<i32>} : memref<144x512xf32, #tpu.memory_space<vmem>>, vector<16x512xf32>,
    %c16_i32 = arith.constant 16 : i32
    %12 = tpu.dynamic_rotate %2 by %c16_i32 dim 1 : vector<16x512xf32>, i32 -> vector<16x512xf32>
    %c1_i32_8 = arith.constant 1 : i32
    %13 = vector.broadcast %c1_i32_8 : i32 to vector<16x512xi32>
    %14 = arith.cmpi sge, %0, %13 : vector<16x512xi32>
    %cst_9 = arith.constant 0.000000e+00 : f32
    %15 = vector.broadcast %cst_9 : f32 to vector<16x512xf32>
    %16 = arith.select %14, %12, %15 : vector<16x512xi1>, vector<16x512xf32>
    %c16 = arith.constant 16 : index
    %c0_10 = arith.constant 0 : index
    %17 = vector.load %arg6[%c16, %c0_10] : memref<144x512xf32, #tpu.memory_space<vmem>>, vector<16x512xf32>
    tpu.vector_store %arg6[%c16, %c0_10], %16 {strides = array<i32>} : memref<144x512xf32, #tpu.memory_space<vmem>>, vector<16x512xf32>,
    %c15_i32 = arith.constant 15 : i32
    %18 = tpu.dynamic_rotate %2 by %c15_i32 dim 1 : vector<16x512xf32>, i32 -> vector<16x512xf32>
    %c1_i32_11 = arith.constant 1 : i32
    %19 = vector.broadcast %c1_i32_11 : i32 to vector<16x512xi32>
    %20 = arith.cmpi sge, %0, %19 : vector<16x512xi32>
    %c15_i32_12 = arith.constant 15 : i32
    %21 = vector.broadcast %c15_i32_12 : i32 to vector<16x512xi32>
    %22 = arith.cmpi slt, %1, %21 : vector<16x512xi32>
    %23 = arith.andi %20, %22 : vector<16x512xi1>
    %cst_13 = arith.constant 0.000000e+00 : f32
    %24 = vector.broadcast %cst_13 : f32 to vector<16x512xf32>
    %25 = arith.select %23, %18, %24 : vector<16x512xi1>, vector<16x512xf32>
    %c32 = arith.constant 32 : index
    %c0_14 = arith.constant 0 : index
    %26 = vector.load %arg6[%c32, %c0_14] : memref<144x512xf32, #tpu.memory_space<vmem>>, vector<16x512xf32>
    tpu.vector_store %arg6[%c32, %c0_14], %25 {strides = array<i32>} : memref<144x512xf32, #tpu.memory_space<vmem>>, vector<16x512xf32>,
    %c1_i32_15 = arith.constant 1 : i32
    %27 = tpu.dynamic_rotate %2 by %c1_i32_15 dim 1 : vector<16x512xf32>, i32 -> vector<16x512xf32>
    %c1_i32_16 = arith.constant 1 : i32
    %28 = vector.broadcast %c1_i32_16 : i32 to vector<16x512xi32>
    %29 = arith.cmpi sge, %1, %28 : vector<16x512xi32>
    %cst_17 = arith.constant 0.000000e+00 : f32
    %30 = vector.broadcast %cst_17 : f32 to vector<16x512xf32>
    %31 = arith.select %29, %27, %30 : vector<16x512xi1>, vector<16x512xf32>
    %c48 = arith.constant 48 : index
    %c0_18 = arith.constant 0 : index
    %32 = vector.load %arg6[%c48, %c0_18] : memref<144x512xf32, #tpu.memory_space<vmem>>, vector<16x512xf32>
    tpu.vector_store %arg6[%c48, %c0_18], %31 {strides = array<i32>} : memref<144x512xf32, #tpu.memory_space<vmem>>, vector<16x512xf32>,
    %c64 = arith.constant 64 : index
    %c0_19 = arith.constant 0 : index
    %33 = vector.load %arg6[%c64, %c0_19] : memref<144x512xf32, #tpu.memory_space<vmem>>, vector<16x512xf32>
    tpu.vector_store %arg6[%c64, %c0_19], %2 {strides = array<i32>} : memref<144x512xf32, #tpu.memory_space<vmem>>, vector<16x512xf32>,
    %c511_i32 = arith.constant 511 : i32
    %34 = tpu.dynamic_rotate %2 by %c511_i32 dim 1 : vector<16x512xf32>, i32 -> vector<16x512xf32>
    %c15_i32_20 = arith.constant 15 : i32
    %35 = vector.broadcast %c15_i32_20 : i32 to vector<16x512xi32>
    %36 = arith.cmpi slt, %1, %35 : vector<16x512xi32>
    %cst_21 = arith.constant 0.000000e+00 : f32
    %37 = vector.broadcast %cst_21 : f32 to vector<16x512xf32>
    %38 = arith.select %36, %34, %37 : vector<16x512xi1>, vector<16x512xf32>
    %c80 = arith.constant 80 : index
    %c0_22 = arith.constant 0 : index
    %39 = vector.load %arg6[%c80, %c0_22] : memref<144x512xf32, #tpu.memory_space<vmem>>, vector<16x512xf32>
    tpu.vector_store %arg6[%c80, %c0_22], %38 {strides = array<i32>} : memref<144x512xf32, #tpu.memory_space<vmem>>, vector<16x512xf32>,
    %c497_i32 = arith.constant 497 : i32
    %40 = tpu.dynamic_rotate %2 by %c497_i32 dim 1 : vector<16x512xf32>, i32 -> vector<16x512xf32>
    %c15_i32_23 = arith.constant 15 : i32
    %41 = vector.broadcast %c15_i32_23 : i32 to vector<16x512xi32>
    %42 = arith.cmpi slt, %0, %41 : vector<16x512xi32>
    %c1_i32_24 = arith.constant 1 : i32
    %43 = vector.broadcast %c1_i32_24 : i32 to vector<16x512xi32>
    %44 = arith.cmpi sge, %1, %43 : vector<16x512xi32>
    %45 = arith.andi %42, %44 : vector<16x512xi1>
    %cst_25 = arith.constant 0.000000e+00 : f32
    %46 = vector.broadcast %cst_25 : f32 to vector<16x512xf32>
    %47 = arith.select %45, %40, %46 : vector<16x512xi1>, vector<16x512xf32>
    %c96 = arith.constant 96 : index
    %c0_26 = arith.constant 0 : index
    %48 = vector.load %arg6[%c96, %c0_26] : memref<144x512xf32, #tpu.memory_space<vmem>>, vector<16x512xf32>
    tpu.vector_store %arg6[%c96, %c0_26], %47 {strides = array<i32>} : memref<144x512xf32, #tpu.memory_space<vmem>>, vector<16x512xf32>,
    %c496_i32 = arith.constant 496 : i32
    %49 = tpu.dynamic_rotate %2 by %c496_i32 dim 1 : vector<16x512xf32>, i32 -> vector<16x512xf32>
    %c15_i32_27 = arith.constant 15 : i32
    %50 = vector.broadcast %c15_i32_27 : i32 to vector<16x512xi32>
    %51 = arith.cmpi slt, %0, %50 : vector<16x512xi32>
    %cst_28 = arith.constant 0.000000e+00 : f32
    %52 = vector.broadcast %cst_28 : f32 to vector<16x512xf32>
    %53 = arith.select %51, %49, %52 : vector<16x512xi1>, vector<16x512xf32>
    %c112 = arith.constant 112 : index
    %c0_29 = arith.constant 0 : index
    %54 = vector.load %arg6[%c112, %c0_29] : memref<144x512xf32, #tpu.memory_space<vmem>>, vector<16x512xf32>
    tpu.vector_store %arg6[%c112, %c0_29], %53 {strides = array<i32>} : memref<144x512xf32, #tpu.memory_space<vmem>>, vector<16x512xf32>,
    %c495_i32 = arith.constant 495 : i32
    %55 = tpu.dynamic_rotate %2 by %c495_i32 dim 1 : vector<16x512xf32>, i32 -> vector<16x512xf32>
    %c15_i32_30 = arith.constant 15 : i32
    %56 = vector.broadcast %c15_i32_30 : i32 to vector<16x512xi32>
    %57 = arith.cmpi slt, %0, %56 : vector<16x512xi32>
    %c15_i32_31 = arith.constant 15 : i32
    %58 = vector.broadcast %c15_i32_31 : i32 to vector<16x512xi32>
    %59 = arith.cmpi slt, %1, %58 : vector<16x512xi32>
    %60 = arith.andi %57, %59 : vector<16x512xi1>
    %cst_32 = arith.constant 0.000000e+00 : f32
    %61 = vector.broadcast %cst_32 : f32 to vector<16x512xf32>
    %62 = arith.select %60, %55, %61 : vector<16x512xi1>, vector<16x512xf32>
    %c128 = arith.constant 128 : index
    %c0_33 = arith.constant 0 : index
    %63 = vector.load %arg6[%c128, %c0_33] : memref<144x512xf32, #tpu.memory_space<vmem>>, vector<16x512xf32>
    tpu.vector_store %arg6[%c128, %c0_33], %62 {strides = array<i32>} : memref<144x512xf32, #tpu.memory_space<vmem>>, vector<16x512xf32>,
    %c0_34 = arith.constant 0 : index
    %c0_35 = arith.constant 0 : index
    %64 = vector.load %arg3[%c0_34, %c0_35] : memref<16x144xf32, #tpu.memory_space<vmem>>, vector<16x144xf32>
    %c0_36 = arith.constant 0 : index
    %c0_37 = arith.constant 0 : index
    %65 = vector.load %arg6[%c0_36, %c0_37] : memref<144x512xf32, #tpu.memory_space<vmem>>, vector<144x512xf32>
    %cst_38 = arith.constant dense<0.000000e+00> : vector<16x512xf32>
    %66 = tpu.matmul %64, %65, %cst_38 {dimension_numbers = #tpu.dot_dimension_numbers<[1], [0], [0], [1], [0, 0, 1, 1], [], []>} : vector<16x144xf32>, vector<144x512xf32>, vector<16x512xf32> -> vector<16x512xf32>
    %cst_39 = arith.constant dense<0.000000e+00> : vector<16xf32>
    %67 = vector.multi_reduction <add>, %66, %cst_39 [1] : vector<16x512xf32> to vector<16xf32>
    %68 = vector.shape_cast %67 : vector<16xf32> to vector<16x1xf32>
    %69 = arith.mulf %66, %66 : vector<16x512xf32>
    %cst_40 = arith.constant dense<0.000000e+00> : vector<16xf32>
    %70 = vector.multi_reduction <add>, %69, %cst_40 [1] : vector<16x512xf32> to vector<16xf32>
    %71 = vector.shape_cast %70 : vector<16xf32> to vector<16x1xf32>
    %cst_41 = arith.constant 0.001953125 : f32
    %72 = vector.broadcast %cst_41 : f32 to vector<16x1xf32>
    %73 = arith.mulf %68, %72 : vector<16x1xf32>
    %cst_42 = arith.constant 0.001953125 : f32
    %74 = vector.broadcast %cst_42 : f32 to vector<16x1xf32>
    %75 = arith.mulf %71, %74 : vector<16x1xf32>
    %76 = arith.mulf %73, %73 : vector<16x1xf32>
    %77 = arith.subf %75, %76 : vector<16x1xf32>
    %78 = vector.broadcast %73 : vector<16x1xf32> to vector<16x512xf32>
    %79 = arith.subf %66, %78 : vector<16x512xf32>
    %cst_43 = arith.constant 9.99999974E-6 : f32
    %80 = vector.broadcast %cst_43 : f32 to vector<16x1xf32>
    %81 = arith.addf %77, %80 : vector<16x1xf32>
    %82 = math.rsqrt %81 : vector<16x1xf32>
    %83 = vector.broadcast %82 : vector<16x1xf32> to vector<16x512xf32>
    %84 = arith.mulf %79, %83 : vector<16x512xf32>
    %cst_44 = arith.constant 0.000000e+00 : f32
    %85 = vector.broadcast %cst_44 : f32 to vector<16x512xf32>
    %86 = arith.maximumf %84, %85 : vector<16x512xf32>
    %c17_i32_45 = arith.constant 17 : i32
    %87 = tpu.dynamic_rotate %86 by %c17_i32_45 dim 1 : vector<16x512xf32>, i32 -> vector<16x512xf32>
    %c1_i32_46 = arith.constant 1 : i32
    %88 = vector.broadcast %c1_i32_46 : i32 to vector<16x512xi32>
    %89 = arith.cmpi sge, %0, %88 : vector<16x512xi32>
    %c1_i32_47 = arith.constant 1 : i32
    %90 = vector.broadcast %c1_i32_47 : i32 to vector<16x512xi32>
    %91 = arith.cmpi sge, %1, %90 : vector<16x512xi32>
    %92 = arith.andi %89, %91 : vector<16x512xi1>
    %cst_48 = arith.constant 0.000000e+00 : f32
    %93 = vector.broadcast %cst_48 : f32 to vector<16x512xf32>
    %94 = arith.select %92, %87, %93 : vector<16x512xi1>, vector<16x512xf32>
    %c0_49 = arith.constant 0 : index
    %c0_50 = arith.constant 0 : index
    %95 = vector.load %arg6[%c0_49, %c0_50] : memref<144x512xf32, #tpu.memory_space<vmem>>, vector<16x512xf32>
    tpu.vector_store %arg6[%c0_49, %c0_50], %94 {strides = array<i32>} : memref<144x512xf32, #tpu.memory_space<vmem>>, vector<16x512xf32>,
    %c16_i32_51 = arith.constant 16 : i32
    %96 = tpu.dynamic_rotate %86 by %c16_i32_51 dim 1 : vector<16x512xf32>, i32 -> vector<16x512xf32>
    %c1_i32_52 = arith.constant 1 : i32
    %97 = vector.broadcast %c1_i32_52 : i32 to vector<16x512xi32>
    %98 = arith.cmpi sge, %0, %97 : vector<16x512xi32>
    %cst_53 = arith.constant 0.000000e+00 : f32
    %99 = vector.broadcast %cst_53 : f32 to vector<16x512xf32>
    %100 = arith.select %98, %96, %99 : vector<16x512xi1>, vector<16x512xf32>
    %c16_54 = arith.constant 16 : index
    %c0_55 = arith.constant 0 : index
    %101 = vector.load %arg6[%c16_54, %c0_55] : memref<144x512xf32, #tpu.memory_space<vmem>>, vector<16x512xf32>
    tpu.vector_store %arg6[%c16_54, %c0_55], %100 {strides = array<i32>} : memref<144x512xf32, #tpu.memory_space<vmem>>, vector<16x512xf32>,
    %c15_i32_56 = arith.constant 15 : i32
    %102 = tpu.dynamic_rotate %86 by %c15_i32_56 dim 1 : vector<16x512xf32>, i32 -> vector<16x512xf32>
    %c1_i32_57 = arith.constant 1 : i32
    %103 = vector.broadcast %c1_i32_57 : i32 to vector<16x512xi32>
    %104 = arith.cmpi sge, %0, %103 : vector<16x512xi32>
    %c15_i32_58 = arith.constant 15 : i32
    %105 = vector.broadcast %c15_i32_58 : i32 to vector<16x512xi32>
    %106 = arith.cmpi slt, %1, %105 : vector<16x512xi32>
    %107 = arith.andi %104, %106 : vector<16x512xi1>
    %cst_59 = arith.constant 0.000000e+00 : f32
    %108 = vector.broadcast %cst_59 : f32 to vector<16x512xf32>
    %109 = arith.select %107, %102, %108 : vector<16x512xi1>, vector<16x512xf32>
    %c32_60 = arith.constant 32 : index
    %c0_61 = arith.constant 0 : index
    %110 = vector.load %arg6[%c32_60, %c0_61] : memref<144x512xf32, #tpu.memory_space<vmem>>, vector<16x512xf32>
    tpu.vector_store %arg6[%c32_60, %c0_61], %109 {strides = array<i32>} : memref<144x512xf32, #tpu.memory_space<vmem>>, vector<16x512xf32>,
    %c1_i32_62 = arith.constant 1 : i32
    %111 = tpu.dynamic_rotate %86 by %c1_i32_62 dim 1 : vector<16x512xf32>, i32 -> vector<16x512xf32>
    %c1_i32_63 = arith.constant 1 : i32
    %112 = vector.broadcast %c1_i32_63 : i32 to vector<16x512xi32>
    %113 = arith.cmpi sge, %1, %112 : vector<16x512xi32>
    %cst_64 = arith.constant 0.000000e+00 : f32
    %114 = vector.broadcast %cst_64 : f32 to vector<16x512xf32>
    %115 = arith.select %113, %111, %114 : vector<16x512xi1>, vector<16x512xf32>
    %c48_65 = arith.constant 48 : index
    %c0_66 = arith.constant 0 : index
    %116 = vector.load %arg6[%c48_65, %c0_66] : memref<144x512xf32, #tpu.memory_space<vmem>>, vector<16x512xf32>
    tpu.vector_store %arg6[%c48_65, %c0_66], %115 {strides = array<i32>} : memref<144x512xf32, #tpu.memory_space<vmem>>, vector<16x512xf32>,
    %c64_67 = arith.constant 64 : index
    %c0_68 = arith.constant 0 : index
    %117 = vector.load %arg6[%c64_67, %c0_68] : memref<144x512xf32, #tpu.memory_space<vmem>>, vector<16x512xf32>
    tpu.vector_store %arg6[%c64_67, %c0_68], %86 {strides = array<i32>} : memref<144x512xf32, #tpu.memory_space<vmem>>, vector<16x512xf32>,
    %c511_i32_69 = arith.constant 511 : i32
    %118 = tpu.dynamic_rotate %86 by %c511_i32_69 dim 1 : vector<16x512xf32>, i32 -> vector<16x512xf32>
    %c15_i32_70 = arith.constant 15 : i32
    %119 = vector.broadcast %c15_i32_70 : i32 to vector<16x512xi32>
    %120 = arith.cmpi slt, %1, %119 : vector<16x512xi32>
    %cst_71 = arith.constant 0.000000e+00 : f32
    %121 = vector.broadcast %cst_71 : f32 to vector<16x512xf32>
    %122 = arith.select %120, %118, %121 : vector<16x512xi1>, vector<16x512xf32>
    %c80_72 = arith.constant 80 : index
    %c0_73 = arith.constant 0 : index
    %123 = vector.load %arg6[%c80_72, %c0_73] : memref<144x512xf32, #tpu.memory_space<vmem>>, vector<16x512xf32>
    tpu.vector_store %arg6[%c80_72, %c0_73], %122 {strides = array<i32>} : memref<144x512xf32, #tpu.memory_space<vmem>>, vector<16x512xf32>,
    %c497_i32_74 = arith.constant 497 : i32
    %124 = tpu.dynamic_rotate %86 by %c497_i32_74 dim 1 : vector<16x512xf32>, i32 -> vector<16x512xf32>
    %c15_i32_75 = arith.constant 15 : i32
    %125 = vector.broadcast %c15_i32_75 : i32 to vector<16x512xi32>
    %126 = arith.cmpi slt, %0, %125 : vector<16x512xi32>
    %c1_i32_76 = arith.constant 1 : i32
    %127 = vector.broadcast %c1_i32_76 : i32 to vector<16x512xi32>
    %128 = arith.cmpi sge, %1, %127 : vector<16x512xi32>
    %129 = arith.andi %126, %128 : vector<16x512xi1>
    %cst_77 = arith.constant 0.000000e+00 : f32
    %130 = vector.broadcast %cst_77 : f32 to vector<16x512xf32>
    %131 = arith.select %129, %124, %130 : vector<16x512xi1>, vector<16x512xf32>
    %c96_78 = arith.constant 96 : index
    %c0_79 = arith.constant 0 : index
    %132 = vector.load %arg6[%c96_78, %c0_79] : memref<144x512xf32, #tpu.memory_space<vmem>>, vector<16x512xf32>
    tpu.vector_store %arg6[%c96_78, %c0_79], %131 {strides = array<i32>} : memref<144x512xf32, #tpu.memory_space<vmem>>, vector<16x512xf32>,
    %c496_i32_80 = arith.constant 496 : i32
    %133 = tpu.dynamic_rotate %86 by %c496_i32_80 dim 1 : vector<16x512xf32>, i32 -> vector<16x512xf32>
    %c15_i32_81 = arith.constant 15 : i32
    %134 = vector.broadcast %c15_i32_81 : i32 to vector<16x512xi32>
    %135 = arith.cmpi slt, %0, %134 : vector<16x512xi32>
    %cst_82 = arith.constant 0.000000e+00 : f32
    %136 = vector.broadcast %cst_82 : f32 to vector<16x512xf32>
    %137 = arith.select %135, %133, %136 : vector<16x512xi1>, vector<16x512xf32>
    %c112_83 = arith.constant 112 : index
    %c0_84 = arith.constant 0 : index
    %138 = vector.load %arg6[%c112_83, %c0_84] : memref<144x512xf32, #tpu.memory_space<vmem>>, vector<16x512xf32>
    tpu.vector_store %arg6[%c112_83, %c0_84], %137 {strides = array<i32>} : memref<144x512xf32, #tpu.memory_space<vmem>>, vector<16x512xf32>,
    %c495_i32_85 = arith.constant 495 : i32
    %139 = tpu.dynamic_rotate %86 by %c495_i32_85 dim 1 : vector<16x512xf32>, i32 -> vector<16x512xf32>
    %c15_i32_86 = arith.constant 15 : i32
    %140 = vector.broadcast %c15_i32_86 : i32 to vector<16x512xi32>
    %141 = arith.cmpi slt, %0, %140 : vector<16x512xi32>
    %c15_i32_87 = arith.constant 15 : i32
    %142 = vector.broadcast %c15_i32_87 : i32 to vector<16x512xi32>
    %143 = arith.cmpi slt, %1, %142 : vector<16x512xi32>
    %144 = arith.andi %141, %143 : vector<16x512xi1>
    %cst_88 = arith.constant 0.000000e+00 : f32
    %145 = vector.broadcast %cst_88 : f32 to vector<16x512xf32>
    %146 = arith.select %144, %139, %145 : vector<16x512xi1>, vector<16x512xf32>
    %c128_89 = arith.constant 128 : index
    %c0_90 = arith.constant 0 : index
    %147 = vector.load %arg6[%c128_89, %c0_90] : memref<144x512xf32, #tpu.memory_space<vmem>>, vector<16x512xf32>
    tpu.vector_store %arg6[%c128_89, %c0_90], %146 {strides = array<i32>} : memref<144x512xf32, #tpu.memory_space<vmem>>, vector<16x512xf32>,
    %c0_91 = arith.constant 0 : index
    %c0_92 = arith.constant 0 : index
    %148 = vector.load %arg4[%c0_91, %c0_92] : memref<16x144xf32, #tpu.memory_space<vmem>>, vector<16x144xf32>
    %c0_93 = arith.constant 0 : index
    %c0_94 = arith.constant 0 : index
    %149 = vector.load %arg6[%c0_93, %c0_94] : memref<144x512xf32, #tpu.memory_space<vmem>>, vector<144x512xf32>
    %cst_95 = arith.constant dense<0.000000e+00> : vector<16x512xf32>
    %150 = tpu.matmul %148, %149, %cst_95 {dimension_numbers = #tpu.dot_dimension_numbers<[1], [0], [0], [1], [0, 0, 1, 1], [], []>} : vector<16x144xf32>, vector<144x512xf32>, vector<16x512xf32> -> vector<16x512xf32>
    %cst_96 = arith.constant dense<0.000000e+00> : vector<16xf32>
    %151 = vector.multi_reduction <add>, %150, %cst_96 [1] : vector<16x512xf32> to vector<16xf32>
    %152 = vector.shape_cast %151 : vector<16xf32> to vector<16x1xf32>
    %153 = arith.mulf %150, %150 : vector<16x512xf32>
    %cst_97 = arith.constant dense<0.000000e+00> : vector<16xf32>
    %154 = vector.multi_reduction <add>, %153, %cst_97 [1] : vector<16x512xf32> to vector<16xf32>
    %155 = vector.shape_cast %154 : vector<16xf32> to vector<16x1xf32>
    %cst_98 = arith.constant 0.001953125 : f32
    %156 = vector.broadcast %cst_98 : f32 to vector<16x1xf32>
    %157 = arith.mulf %152, %156 : vector<16x1xf32>
    %cst_99 = arith.constant 0.001953125 : f32
    %158 = vector.broadcast %cst_99 : f32 to vector<16x1xf32>
    %159 = arith.mulf %155, %158 : vector<16x1xf32>
    %160 = arith.mulf %157, %157 : vector<16x1xf32>
    %161 = arith.subf %159, %160 : vector<16x1xf32>
    %162 = vector.broadcast %157 : vector<16x1xf32> to vector<16x512xf32>
    %163 = arith.subf %150, %162 : vector<16x512xf32>
    %cst_100 = arith.constant 9.99999974E-6 : f32
    %164 = vector.broadcast %cst_100 : f32 to vector<16x1xf32>
    %165 = arith.addf %161, %164 : vector<16x1xf32>
    %166 = math.rsqrt %165 : vector<16x1xf32>
    %167 = vector.broadcast %166 : vector<16x1xf32> to vector<16x512xf32>
    %168 = arith.mulf %163, %167 : vector<16x512xf32>
    %169 = arith.addf %168, %2 : vector<16x512xf32>
    %cst_101 = arith.constant 0.000000e+00 : f32
    %170 = vector.broadcast %cst_101 : f32 to vector<16x512xf32>
    %171 = arith.maximumf %169, %170 : vector<16x512xf32>
    %c0_102 = arith.constant 0 : index
    %c0_103 = arith.constant 0 : index
    %172 = vector.load %arg5[%c0_102, %c0_103] : memref<16x512xf32, #tpu.memory_space<vmem>>, vector<16x512xf32>
    tpu.vector_store %arg5[%c0_102, %c0_103], %171 {strides = array<i32>} : memref<16x512xf32, #tpu.memory_space<vmem>>, vector<16x512xf32>,
    return
  }
}

</mosaic_0001>

<bundles_post_ra>
// kernel: tpu_custom_call.1
= control target key start
LH: loop header
LB: loop body
LE: loop exit
PB: predicated region body
PF: predicated region fallthrough
CT: control target
= control target key end

     0   :  { %10 = vsyncpa [#allocation4], 0  ;;  %s3591_s0 = inlined_call_operand.hbm [shape: f32[16,512], index: 0, kind: input, shape index: {}]   ;;  %s3592_s1 = inlined_call_operand.hbm [shape: s32[16,512], index: 1, kind: input, shape index: {}]   ;;  %s3593_s2 = inlined_call_operand.hbm [shape: s32[16,512], index: 2, kind: input, shape index: {}]   ;;  %s3594_s3 = inlined_call_operand.hbm [shape: f32[16,144], index: 3, kind: input, shape index: {}]   ;;  %s3595_s4 = inlined_call_operand.hbm [shape: f32[16,144], index: 4, kind: input, shape index: {}]   ;;  %s3596_s5 = inlined_call_operand.hbm [shape: f32[16,512], index: 5, kind: output, shape index: {}]  }
   0x1   :  { %11 = vsyncpa [#allocation7], 0 }
   0x2   :  { %12 = vsyncpa [#allocation10], 0 }
   0x3   :  { %13 = vsyncpa [#allocation5], 0  ;;  %s2316_s18 = smov [#allocation6]   ;;  %s2317_s20 = smov [#allocation9]  }
   0x4   :  { %s31_s19 = sshll.u32 %s2316_s18, 4  ;;  %s55_s21 = sshll.u32 %s2317_s20, 4  ;;  %s32_s19 = int_to_ptr.vmem [resolvable:$true] %s31_s19  ;;  %s2363_s21 = int_to_ptr.vmem [resolvable:$true] %s55_s21 }
   0x5   :  { %s2176_s24 = scalar_lea.hbm %s3592_s1, 1024 }
   0x6   :  { %p2177_p0 = scmp.ne.s32.totalorder %s3592_s1, %s2176_s24  ;;  %p2180_p1 = scmp.lt.u32.totalorder %s2176_s24, %s3592_s1 }
   0x8   :  { %p2182_p2 = pnand %p2180_p1, %p2177_p0 }
   0xa   :  { %2185 = shalt.err (!%p2182_p2)
}
   0xb   :  { %s2186_s29 = scalar_lea.vmem %s32_s19, 1024  ;;  %p2191_p4 = scmp.lt.s32.totalorder %s32_s19, %s32_s19 }
   0xc   :  { %p2187_p3 = scmp.ne.s32.totalorder %s32_s19, %s2186_s29  ;;  %p2192_p5 = scmp.lt.s32.totalorder %s2186_s29, %s2186_s29 }
   0xe   :  { %p2193_p6 = por %p2192_p5, %p2191_p4 }
  0x10   :  { %p2194_p7 = pnand %p2193_p6, %p2187_p3 }
  0x12   :  { %2197 = shalt.err (!%p2194_p7)
}
  0x13   :  { %s2318_s30 = smov 512   ;;  %s2319_s6 = smov 32  }
  0x14   :  { %37 = dma.hbm_to_vmem [thread:$0]  %s3592_s1, 1024, %s32_s19, [#allocation7], %s2318_s30, %s2318_s30, %s2319_s6  }
  0x15   :  { %s2198_s11 = scalar_lea.hbm %s3594_s3, 512 }
  0x16   :  { %p2199_p8 = scmp.ne.s32.totalorder %s3594_s3, %s2198_s11  ;;  %p2202_p9 = scmp.lt.u32.totalorder %s2198_s11, %s3594_s3 }
  0x18   :  { %p2204_p10 = pnand %p2202_p9, %p2199_p8 }
  0x1a   :  { %2207 = shalt.err (!%p2204_p10)
}
  0x1b   :  { %s2208_s16 = scalar_lea.vmem %s2363_s21, 512  ;;  %p2213_p12 = scmp.lt.s32.totalorder %s2363_s21, %s2363_s21 }
  0x1c   :  { %p2209_p11 = scmp.ne.s32.totalorder %s2363_s21, %s2208_s16  ;;  %p2214_p13 = scmp.lt.s32.totalorder %s2208_s16, %s2208_s16 }
  0x1e   :  { %p2215_p0 = por %p2214_p13, %p2213_p12 }
  0x20   :  { %p2216_p1 = pnand %p2215_p0, %p2209_p11 }
  0x22   :  { %2219 = shalt.err (!%p2216_p1)
}
  0x23   :  { %s2320_s1 = smov 256   ;;  %s2321_s17 = smov 16  }
  0x24   :  { %61 = dma.hbm_to_vmem [thread:$0]  %s3594_s3, 512, %s2363_s21, [#allocation10], %s2320_s1, %s2320_s1, %s2321_s17  }
  0x25   :  { %s2322_s20 = smov [#allocation3]   ;;  %s2323_s23 = smov [#allocation8]  }
  0x26   :  { %s19_s22 = sshll.u32 %s2322_s20, 4  ;;  %s43_s24 = sshll.u32 %s2323_s23, 4  ;;  %s20_s22 = int_to_ptr.vmem [resolvable:$true] %s19_s22  ;;  %s2400_s24 = int_to_ptr.vmem [resolvable:$true] %s43_s24 }
  0x27   :  { %s2220_s27 = scalar_lea.hbm %s3591_s0, 1024 }
  0x28   :  { %p2221_p2 = scmp.ne.s32.totalorder %s3591_s0, %s2220_s27  ;;  %p2224_p3 = scmp.lt.u32.totalorder %s2220_s27, %s3591_s0 }
  0x2a   :  { %p2226_p4 = pnand %p2224_p3, %p2221_p2 }
  0x2c   :  { %2229 = shalt.err (!%p2226_p4)
}
  0x2d   :  { %s2230_s3 = scalar_lea.vmem %s20_s22, 1024  ;;  %p2235_p6 = scmp.lt.s32.totalorder %s20_s22, %s20_s22 }
  0x2e   :  { %p2231_p5 = scmp.ne.s32.totalorder %s20_s22, %s2230_s3  ;;  %p2236_p7 = scmp.lt.s32.totalorder %s2230_s3, %s2230_s3 }
  0x30   :  { %p2237_p8 = por %p2236_p7, %p2235_p6 }
  0x32   :  { %p2238_p9 = pnand %p2237_p8, %p2231_p5 }
  0x34   :  { %2241 = shalt.err (!%p2238_p9)
}
  0x35   :  { %25 = dma.hbm_to_vmem [thread:$0]  %s3591_s0, 1024, %s20_s22, [#allocation4], %s2318_s30, %s2318_s30, %s2319_s6  }
  0x36   :  { %s2242_s12 = scalar_lea.hbm %s3593_s2, 1024 }
  0x37   :  { %p2243_p10 = scmp.ne.s32.totalorder %s3593_s2, %s2242_s12  ;;  %p2246_p11 = scmp.lt.u32.totalorder %s2242_s12, %s3593_s2 }
  0x39   :  { %p2248_p12 = pnand %p2246_p11, %p2243_p10 }
  0x3b   :  { %2251 = shalt.err (!%p2248_p12)
}
  0x3c   :  { %s2252_s18 = scalar_lea.vmem %s2400_s24, 1024  ;;  %p2257_p0 = scmp.lt.s32.totalorder %s2400_s24, %s2400_s24 }
  0x3d   :  { %p2253_p13 = scmp.ne.s32.totalorder %s2400_s24, %s2252_s18  ;;  %p2258_p1 = scmp.lt.s32.totalorder %s2252_s18, %s2252_s18 }
  0x3f   :  { %p2259_p2 = por %p2258_p1, %p2257_p0 }
  0x41   :  { %p2260_p3 = pnand %p2259_p2, %p2253_p13 }
  0x43   :  { %2263 = shalt.err (!%p2260_p3)
}
  0x44   :  { %49 = dma.hbm_to_vmem [thread:$0]  %s3593_s2, 1024, %s2400_s24, [#allocation7], %s2318_s30, %s2318_s30, %s2319_s6  }
  0x45   :  { %s2324_s20 = smov [#allocation11]   ;;  %s2264_s26 = scalar_lea.hbm %s3595_s4, 512 }
  0x46   :  { %s67_s22 = sshll.u32 %s2324_s20, 4  ;;  %p2265_p4 = scmp.ne.s32.totalorder %s3595_s4, %s2264_s26  ;;  %s68_s22 = int_to_ptr.vmem [resolvable:$true] %s67_s22 }
  0x47   :  { %p2268_p5 = scmp.lt.u32.totalorder %s2264_s26, %s3595_s4 }
  0x49   :  { %p2270_p6 = pnand %p2268_p5, %p2265_p4 }
  0x4b   :  { %2273 = shalt.err (!%p2270_p6)
}
  0x4c   :  { %s2274_s8 = scalar_lea.vmem %s68_s22, 512  ;;  %p2279_p8 = scmp.lt.s32.totalorder %s68_s22, %s68_s22 }
  0x4d   :  { %p2275_p7 = scmp.ne.s32.totalorder %s68_s22, %s2274_s8  ;;  %p2280_p9 = scmp.lt.s32.totalorder %s2274_s8, %s2274_s8 }
  0x4f   :  { %p2281_p10 = por %p2280_p9, %p2279_p8 }
  0x51   :  { %p2282_p11 = pnand %p2281_p10, %p2275_p7 }
  0x53   :  { %2285 = shalt.err (!%p2282_p11)
}
  0x54   :  { %73 = dma.hbm_to_vmem [thread:$0]  %s3595_s4, 512, %s68_s22, [#allocation10], %s2320_s1, %s2320_s1, %s2321_s17  }
  0x55   :  { %2308 = dma.done.wait [#allocation4], 1024  }
  0x56   :  { %2309 = vsyncadd [#allocation4], 4294966272 }
  0x57   :  { %2310 = dma.done.wait [#allocation7], 2048  }
  0x58   :  { %2311 = vsyncadd [#allocation7], 4294965248 }
  0x59   :  { %2312 = dma.done.wait [#allocation10], 1024  }
  0x5a   :  { %2313 = vsyncadd [#allocation10], 4294966272  ;;  %v2452_v0 = vld [vmem:[#allocation3 + $0x18] sm:$0xff]  ;;  %v2456_v2 = vld [vmem:[#allocation3] sm:$0xff]  ;;  %s2325_s4 = smov 17   ;;  %s2326_s1 = smov 15   ;;  %v129_v19 = vlaneseq }
  0x5b   :  { %v2454_v1 = vld [vmem:[#allocation3 + $0x38] sm:$0xff]  ;;  %v2460_v4 = vld [vmem:[#allocation3 + $0x20] sm:$0xff]  ;;  %v2462_v5 = vld [vmem:[#allocation3 + $0x10] sm:$0xff]  ;;  %s2327_s3 = smov 1   ;;  %s2328_s21 = smov 127   ;;  %vm3597_vm0 = vcmask 130048  }
  0x5c   :  { %v1850_v3 = vpack.i.bf16 %v2454_v1, %v2452_v0  ;;  %v2464_v6 = vld [vmem:[#allocation3 + $0x30] sm:$0xff]  ;;  %v1840_v7 = vpack.i.bf16 %v2460_v4, %v2456_v2  ;;  %v2468_v8 = vld [vmem:[#allocation3 + $0x8] sm:$0xff]  ;;  %s2329_s9 = smov 113   ;;  %s2330_s10 = smov 112   ;;  %v2522_v17 = vld [vmem:[#allocation6 + $0x18] sm:$0xff]  ;;  %v2566_v33 = vand.u32 127, %v129_v19 }
  0x5d   :  { %v2470_v9 = vld [vmem:[#allocation3 + $0x28] sm:$0xff]  ;;  %v1855_v10 = vpack.i.bf16 %v2464_v6, %v2462_v5  ;;  %s2331_s11 = smov 111   ;;  %v2524_v18 = vld [vmem:[#allocation8 + $0x18] sm:$0xff]  ;;  %v2546_v24 = vld [vmem:[#allocation6] sm:$0xff]  ;;  %vm3601_vm7 = vcmp.ge.s32.totalorder %v2522_v17, 1  ;;  %v3689_v35 = vmov 0 }
  0x5e   :  { %1851 = vrot.lane.b32.xlu1 %v1850_v3, %s2325_s4  ;;  %1841 = vrot.lane.b32.xlu0 %v1840_v7, %s2325_s4  ;;  %v1845_v11 = vpack.i.bf16 %v2470_v9, %v2468_v8  ;;  %v516_v12 = vld [vmem:[#allocation9 + $0x8] sm:$0xff]  ;;  %v2534_v21 = vld [vmem:[#allocation6 + $0x38] sm:$0xff]  ;;  %v2548_v25 = vld [vmem:[#allocation8] sm:$0xff]  ;;  %vm3600_vm8 = vcmp.ge.s32.totalorder %v2524_v18, 1  ;;  %vm3609_vm12 = vcmp.ge.s32.totalorder %v2546_v24, 1  ;;  %v3691_v36 = vmov 0 }
  0x5f   :  { %1479 = vmatprep.mubr.msk.f32.mxu0 %vm3597_vm0, %v516_v12  ;;  %1481 = vmatprep.mubr.msk.f32.mxu1 %vm3597_vm0, %v516_v12  ;;  %v2510_v13 = vld [vmem:[#allocation6 + $0x8] sm:$0xff]  ;;  %v2536_v22 = vld [vmem:[#allocation8 + $0x38] sm:$0xff]  ;;  %v2552_v26 = vld [vmem:[#allocation6 + $0x20] sm:$0xff]  ;;  %vm3603_vm9 = vcmp.ge.s32.totalorder %v2534_v21, 1  ;;  %vm3606_vm13 = vcmp.ge.s32.totalorder %v2548_v25, 1  ;;  %v3693_v41 = vmov 0 }
  0x60   :  { %v2512_v14 = vld [vmem:[#allocation8 + $0x8] sm:$0xff]  ;;  %vm3605_vm1 = vcmp.ge.s32.totalorder %v2510_v13, 1  ;;  %v2554_v27 = vld [vmem:[#allocation8 + $0x20] sm:$0xff]  ;;  %v2556_v28 = vld [vmem:[#allocation6 + $0x10] sm:$0xff]  ;;  %vm3602_vm10 = vcmp.ge.s32.totalorder %v2536_v22, 1  ;;  %vm3608_vm15 = vcmp.ge.s32.totalorder %v2552_v26, 1 }
  0x61   :  { %v2514_v15 = vld [vmem:[#allocation6 + $0x28] sm:$0xff]  ;;  %vm3599_vm2 = vcmp.ge.s32.totalorder %v2512_v14, 1  ;;  %v2560_v29 = vld [vmem:[#allocation6 + $0x30] sm:$0xff]  ;;  %vm2578_vm14 = vmand %vm3601_vm7, %vm3600_vm8  ;;  %vm3607_vm0 = vcmp.ge.s32.totalorder %v2554_v27, 1  ;;  %v3695_v43 = vmov 0  ;;  %v3697_v47 = vmov 0 }
  0x62   :  { %1856 = vrot.lane.b32.xlu1 %v1855_v10, %s2325_s4  ;;  %1846 = vrot.lane.b32.xlu0 %v1845_v11, %s2325_s4  ;;  %v2516_v16 = vld [vmem:[#allocation8 + $0x28] sm:$0xff]  ;;  %vm3604_vm3 = vcmp.ge.s32.totalorder %v2514_v15, 1  ;;  %vm2530_vm5 = vmand %vm3605_vm1, %vm3599_vm2  ;;  %v2562_v30 = vld [vmem:[#allocation8 + $0x10] sm:$0xff]  ;;  %v3690_v35 = vsel %vm2578_vm14, 4294967295, %v3689_v35  ;;  %vm3613_vm2 = vcmp.ge.s32.totalorder %v2556_v28, 1  ;;  %vm3612_vm11 = vcmp.ge.s32.totalorder %v2560_v29, 1 }
  0x63   :  { %vm3598_vm4 = vcmp.ge.s32.totalorder %v2516_v16, 1  ;;  %v2564_v31 = vld [vmem:[#allocation8 + $0x30] sm:$0xff]  ;;  %vm3610_vm8 = vcmp.ge.s32.totalorder %v2562_v30, 1  ;;  %vm3616_vm1 = vcmp.lt.s32.totalorder %v2566_v33, 16  ;;  %v3699_v50 = vmov 0 }
  0x64   :  { %vm2542_vm6 = vmand %vm3604_vm3, %vm3598_vm4  ;;  %vm3611_vm7 = vcmp.ge.s32.totalorder %v2564_v31, 1  ;;  %v3703_v19 = vmov 0 }
  0x65   :  { %vm2588_vm4 = vmand %vm3603_vm9, %vm3602_vm10  ;;  %vm3614_vm9 = vcmp.lt.s32.totalorder %v2566_v33, 17 }
  0x66   :  { %1866 = vrot.lane.b32.xlu1 %v1845_v11, %s2321_s17  ;;  %1861 = vrot.lane.b32.xlu0 %v1840_v7, %s2321_s17  ;;  %v3692_v36 = vsel %vm2588_vm4, 4294967295, %v3691_v36  ;;  %vm2600_vm10 = vmand %vm3609_vm12, %vm3606_vm13 }
  0x67   :  { %v3694_v41 = vsel %vm2600_vm10, 4294967295, %v3693_v41  ;;  %vm2609_vm3 = vmand %vm3608_vm15, %vm3607_vm0  ;;  %vm3702_vm15 = vcmp.ge.s32.totalorder %v2514_v15, 1 }
  0x68   :  { %v3696_v43 = vsel %vm2609_vm3, 4294967295, %v3695_v43  ;;  %vm2618_vm13 = vmand %vm3613_vm2, %vm3610_vm8  ;;  %vm3701_vm2 = vcmp.ge.s32.totalorder %v2510_v13, 1 }
  0x69   :  { %v3698_v47 = vsel %vm2618_vm13, 4294967295, %v3697_v47  ;;  %vm2628_vm12 = vmand %vm3612_vm11, %vm3611_vm7  ;;  %vm3706_vm11 = vcmp.ge.s32.totalorder %v2546_v24, 1 }
  0x6a   :  { %1876 = vrot.lane.b32.xlu1 %v1855_v10, %s2321_s17  ;;  %1871 = vrot.lane.b32.xlu0 %v1850_v3, %s2321_s17  ;;  %v3700_v50 = vsel %vm2628_vm12, 4294967295, %v3699_v50  ;;  %vm3615_vm8 = vmpackc.low %vm2588_vm4, %vm2578_vm14  ;;  %vm3724_vm4 = vcmp.lt.s32.totalorder %v2566_v33, 16  ;;  %vm3624_vm14 = vcmp.lt.s32.totalorder %v2554_v27, 15 }
  0x6b   :  { %vm3705_vm0 = vmpackc.low %vm2542_vm6, %vm2530_vm5 }
  0x6e   :  { %1886 = vrot.lane.b32.xlu1 %v1845_v11, %s2326_s1  ;;  %1881 = vrot.lane.b32.xlu0 %v1840_v7, %s2326_s1 }
  0x72   :  { %1896 = vrot.lane.b32.xlu1 %v1855_v10, %s2326_s1  ;;  %1891 = vrot.lane.b32.xlu0 %v1850_v3, %s2326_s1 }
  0x76   :  { %1906 = vrot.lane.b32.xlu1 %v1845_v11, %s2327_s3  ;;  %1901 = vrot.lane.b32.xlu0 %v1840_v7, %s2327_s3 }
  0x7a   :  { %1916 = vrot.lane.b32.xlu1 %v1855_v10, %s2327_s3  ;;  %1911 = vrot.lane.b32.xlu0 %v1850_v3, %s2327_s3 }
  0x7e   :  { %1926 = vrot.lane.b32.xlu1 %v1855_v10, %s2328_s21  ;;  %1921 = vrot.lane.b32.xlu0 %v1845_v11, %s2328_s21 }
  0x82   :  { %1936 = vrot.lane.b32.xlu1 %v1850_v3, %s2328_s21  ;;  %1931 = vrot.lane.b32.xlu0 %v1840_v7, %s2328_s21 }
  0x86   :  { %1946 = vrot.lane.b32.xlu1 %v1855_v10, %s2329_s9  ;;  %1941 = vrot.lane.b32.xlu0 %v1845_v11, %s2329_s9 }
  0x8a   :  { %1956 = vrot.lane.b32.xlu1 %v1850_v3, %s2329_s9  ;;  %1951 = vrot.lane.b32.xlu0 %v1840_v7, %s2329_s9 }
  0x8e   :  { %1966 = vrot.lane.b32.xlu1 %v1855_v10, %s2330_s10  ;;  %1961 = vrot.lane.b32.xlu0 %v1845_v11, %s2330_s10 }
  0x92   :  { %1976 = vrot.lane.b32.xlu1 %v1850_v3, %s2330_s10  ;;  %1971 = vrot.lane.b32.xlu0 %v1840_v7, %s2330_s10 }
  0x96   :  { %1986 = vrot.lane.b32.xlu1 %v1855_v10, %s2331_s11  ;;  %1981 = vrot.lane.b32.xlu0 %v1845_v11, %s2331_s11 }
  0x9a   :  { %1996 = vrot.lane.b32.xlu1 %v1850_v3, %s2331_s11  ;;  %1991 = vrot.lane.b32.xlu0 %v1840_v7, %s2331_s11 }
  0xd0   :  { %v1852_v32 = vpop.permute.xlu1 %1851  ;;  %v1842_v34 = vpop.permute.xlu0 %1841 }
  0xd1   :  { %v1854_v37 = vunpack.i.h.bf16 %v1852_v32  ;;  %v1853_v38 = vunpack.i.l.bf16 %v1852_v32  ;;  %v1844_v39 = vunpack.i.h.bf16 %v1842_v34  ;;  %v1843_v40 = vunpack.i.l.bf16 %v1842_v34 }
  0xd2   :  { %v3708_v32 = vmov 0 }
  0xd3   :  { %v138_v53 = vsel %vm3614_vm9, %v1853_v38, %v1843_v40  ;;  %v139_v54 = vsel %vm3614_vm9, %v1854_v37, %v1844_v39 }
  0xd4   :  { %v1857_v42 = vpop.permute.xlu1 %1856  ;;  %v1847_v46 = vpop.permute.xlu0 %1846  ;;  %v1618_v11 = vpack.c.bf16 %v139_v54, %v138_v53  ;;  %v3728_v54 = vmov 0 }
  0xd5   :  { %v1859_v44 = vunpack.i.h.bf16 %v1857_v42  ;;  %v1858_v45 = vunpack.i.l.bf16 %v1857_v42  ;;  %v1849_v48 = vunpack.i.h.bf16 %v1847_v46  ;;  %v1848_v49 = vunpack.i.l.bf16 %v1847_v46 }
  0xd6   :  { %v3718_v46 = vmov 0 }
  0xd7   :  { %v132_v51 = vsel %vm3614_vm9, %v1858_v45, %v1853_v38  ;;  %v133_v52 = vsel %vm3614_vm9, %v1859_v44, %v1854_v37  ;;  %v136_v56 = vsel %vm3614_vm9, %v1843_v40, %v1848_v49  ;;  %v137_v57 = vsel %vm3614_vm9, %v1844_v39, %v1849_v48 }
  0xd8   :  { %v1867_v55 = vpop.permute.xlu1 %1866  ;;  %v1667_v58 = vpack.c.bf16 %v133_v52, %v132_v51  ;;  %v134_v59 = vsel %vm3614_vm9, %v1848_v49, %v1858_v45  ;;  %v1862_v62 = vpop.permute.xlu0 %1861  ;;  %v1615_v63 = vpack.c.bf16 %v137_v57, %v136_v56  ;;  %v135_v3 = vsel %vm3614_vm9, %v1849_v48, %v1859_v44  ;;  %vm2669_vm9 = vmpackc.low %vm3702_vm15, %vm3701_vm2 }
  0xd9   :  { %v1869_v60 = vunpack.i.h.bf16 %v1867_v55  ;;  %v1868_v61 = vunpack.i.l.bf16 %v1867_v55  ;;  %v1864_v7 = vunpack.i.h.bf16 %v1862_v62  ;;  %v1863_v10 = vunpack.i.l.bf16 %v1862_v62  ;;  %vm3710_vm2 = vmpackc.low %vm2609_vm3, %vm2600_vm10 }
  0xda   :  { %1669 = vmatprep.subr.msk.bf16.mxu1 %vm3615_vm8, %v1667_v58  ;;  %v1670_v12 = vpack.c.bf16 %v135_v3, %v134_v59  ;;  %v3704_v19 = vsel %vm2669_vm9, 4294967295, %v3703_v19  ;;  %1617 = vmatprep.subr.msk.bf16.mxu0 %vm3705_vm0, %v1615_v63  ;;  %vm3707_vm8 = vcmp.ge.s32.totalorder %v2552_v26, 1  ;;  %vm3711_vm0 = vmpackc.low %vm2628_vm12, %vm2618_vm13  ;;  %v3714_v39 = vmov 0 }
  0xdb   :  { %vm2682_vm7 = vmpackc.low %vm3707_vm8, %vm3706_vm11  ;;  %v202_v34 = vsel %vm3616_vm1, %v1864_v7, %v1869_v60  ;;  %v201_v37 = vsel %vm3616_vm1, %v1863_v10, %v1868_v61  ;;  %1620 = vmatpush1.bf16.msk.msra.mxu0 %vm3710_vm2, %v1618_v11  ;;  %vm3712_vm8 = vcmp.lt.s32.totalorder %v2512_v14, 15  ;;  %vm3713_vm11 = vcmp.ge.s32.totalorder %v2510_v13, 1 }
  0xdc   :  { %v3709_v32 = vsel %vm2682_vm7, 4294967295, %v3708_v32  ;;  %1672 = vmatpush1.bf16.msk.msra.mxu1 %vm3711_vm0, %v1670_v12  ;;  %v1877_v38 = vpop.permute.xlu1 %1876  ;;  %vm2704_vm15 = vmand %vm3713_vm11, %vm3712_vm8  ;;  %v1621_v40 = vpack.c.bf16 %v202_v34, %v201_v37  ;;  %v1872_v45 = vpop.permute.xlu0 %1871  ;;  %vm3716_vm2 = vcmp.lt.s32.totalorder %v2516_v16, 15  ;;  %vm3717_vm13 = vcmp.ge.s32.totalorder %v2514_v15, 1 }
  0xdd   :  { %v3715_v39 = vsel %vm2704_vm15, 4294967295, %v3714_v39  ;;  %v1879_v42 = vunpack.i.h.bf16 %v1877_v38  ;;  %v1878_v44 = vunpack.i.l.bf16 %v1877_v38  ;;  %vm2713_vm0 = vmand %vm3717_vm13, %vm3716_vm2  ;;  %v1874_v48 = vunpack.i.h.bf16 %v1872_v45 }
  0xde   :  { %v3719_v46 = vsel %vm2713_vm0, 4294967295, %v3718_v46  ;;  %v1873_v49 = vunpack.i.l.bf16 %v1872_v45  ;;  %vm3720_vm8 = vcmp.ge.s32.totalorder %v2522_v17, 1  ;;  %vm3721_vm11 = vcmp.ge.s32.totalorder %v2534_v21, 1  ;;  %vm3725_vm13 = vmmov %vm3724_vm4  ;;  %1623 = vmatprep.subr.msk.bf16.mxu0 %vm2669_vm9, %v1621_v40 }
  0xdf   :  { %vm2722_vm1 = vmpackc.low %vm3721_vm11, %vm3720_vm8  ;;  %v3722_v51 = vmov 0  ;;  %v199_v52 = vsel %vm3724_vm4, %v1868_v61, %v1878_v44  ;;  %v200_v53 = vsel %vm3725_vm13, %v1869_v60, %v1879_v42  ;;  %vm3726_vm12 = vcmp.ge.s32.totalorder %v2556_v28, 1 }
  0xe0   :  { %v3723_v51 = vsel %vm2722_vm1, 4294967295, %v3722_v51  ;;  %vm3727_vm8 = vcmp.ge.s32.totalorder %v2560_v29, 1  ;;  %v1676_v55 = vpack.c.bf16 %v200_v53, %v199_v52  ;;  %v198_v56 = vsel %vm3724_vm4, %v1879_v42, %v1874_v48  ;;  %vm3730_vm13 = vmmov %vm3724_vm4  ;;  %v1887_v59 = vpop.permute.xlu1 %1886  ;;  %v1882_v3 = vpop.permute.xlu0 %1881 }
  0xe1   :  { %vm2738_vm11 = vmpackc.low %vm3727_vm8, %vm3726_vm12  ;;  %v197_v57 = vsel %vm3730_vm13, %v1878_v44, %v1873_v49  ;;  %v1889_v62 = vunpack.i.h.bf16 %v1887_v59  ;;  %v1888_v63 = vunpack.i.l.bf16 %v1887_v59  ;;  %vm3734_vm13 = vcmp.ge.s32.totalorder %v2546_v24, 1 }
  0xe2   :  { %v3729_v54 = vsel %vm2738_vm11, 4294967295, %v3728_v54  ;;  %vm3731_vm9 = vmmov %vm3724_vm4  ;;  %v1673_v61 = vpack.c.bf16 %v198_v56, %v197_v57  ;;  %v3735_v11 = vmov 0  ;;  %v1884_v12 = vunpack.i.h.bf16 %v1882_v3 }
  0xe3   :  { %v203_v58 = vsel %vm3731_vm9, %v1873_v49, %v1863_v10  ;;  %vm3732_vm8 = vmmov %vm3724_vm4  ;;  %vm3733_vm4 = vcmp.lt.s32.totalorder %v2548_v25, 15  ;;  %v1883_v34 = vunpack.i.l.bf16 %v1882_v3  ;;  %vm3737_vm9 = vcmp.ge.s32.totalorder %v2552_v26, 1 }
  0xe4   :  { %v204_v60 = vsel %vm3732_vm8, %v1874_v48, %v1864_v7  ;;  %vm2759_vm2 = vmand %vm3734_vm13, %vm3733_vm4  ;;  %v3738_v7 = vmov 0  ;;  %1675 = vmatprep.subr.msk.bf16.mxu1 %vm2722_vm1, %v1673_v61  ;;  %vm3740_vm4 = vcmp.lt.s32.totalorder %v2524_v18, 15  ;;  %vm3741_vm13 = vcmp.ge.s32.totalorder %v2522_v17, 1  ;;  %v1897_v42 = vpop.permute.xlu1 %1896  ;;  %v1892_v52 = vpop.permute.xlu0 %1891 }
  0xe5   :  { %v3736_v11 = vsel %vm2759_vm2, 4294967295, %v3735_v11  ;;  %v1624_v10 = vpack.c.bf16 %v204_v60, %v203_v58  ;;  %vm2767_vm8 = vmand %vm3737_vm9, %vm3624_vm14  ;;  %v3742_v37 = vmov 0  ;;  %vm3744_vm9 = vcmp.lt.s32.totalorder %v2566_v33, 15  ;;  %1678 = vmatpush1.bf16.msk.msra.mxu1 %vm2738_vm11, %v1676_v55 }
  0xe6   :  { %v3739_v7 = vsel %vm2767_vm8, 4294967295, %v3738_v7  ;;  %vm2778_vm10 = vmand %vm3741_vm13, %vm3740_vm4  ;;  %v243_v38 = vsel %vm3744_vm9, %v1884_v12, %v1889_v62  ;;  %vm3746_vm4 = vcmp.lt.s32.totalorder %v2536_v22, 15  ;;  %vm3747_vm13 = vcmp.ge.s32.totalorder %v2534_v21, 1 }
  0xe7   :  { %v3743_v37 = vsel %vm2778_vm10, 4294967295, %v3742_v37  ;;  %vm3745_vm14 = vmmov %vm3744_vm9  ;;  %1626 = vmatpush1.bf16.msk.msra.mxu0 %vm2682_vm7, %v1624_v10  ;;  %v3748_v44 = vmov 0  ;;  %v1899_v48 = vunpack.i.h.bf16 %v1897_v42  ;;  %v1898_v49 = vunpack.i.l.bf16 %v1897_v42 }
  0xe8   :  { %v242_v40 = vsel %vm3745_vm14, %v1883_v34, %v1888_v63  ;;  %vm2795_vm12 = vmand %vm3747_vm13, %vm3746_vm4  ;;  %vm3750_vm14 = vcmp.lt.s32.totalorder %v2562_v30, 15  ;;  %vm3751_vm9 = vcmp.ge.s32.totalorder %v2556_v28, 1  ;;  %v3752_v53 = vmov 0  ;;  %v1907_v3 = vpop.permute.xlu1 %1906 }
  0xe9   :  { %v3749_v44 = vsel %vm2795_vm12, 4294967295, %v3748_v44  ;;  %v1627_v45 = vpack.c.bf16 %v243_v38, %v242_v40  ;;  %vm2803_vm3 = vmand %vm3751_vm9, %vm3750_vm14  ;;  %v1894_v55 = vunpack.i.h.bf16 %v1892_v52  ;;  %v1893_v56 = vunpack.i.l.bf16 %v1892_v52 }
  0xea   :  { %v3753_v53 = vsel %vm2803_vm3, 4294967295, %v3752_v53  ;;  %vm3754_vm11 = vcmp.lt.s32.totalorder %v2564_v31, 15  ;;  %vm3755_vm4 = vcmp.ge.s32.totalorder %v2560_v29, 1  ;;  %v3756_v57 = vmov 0  ;;  %vm3760_vm14 = vmpackc.low %vm2713_vm0, %vm2704_vm15 }
  0xeb   :  { %vm2811_vm13 = vmand %vm3755_vm4, %vm3754_vm11  ;;  %vm3758_vm1 = vcmp.lt.s32.totalorder %v2566_v33, 15  ;;  %1629 = vmatprep.subr.msk.bf16.mxu0 %vm3760_vm14, %v1627_v45  ;;  %v1909_v40 = vunpack.i.h.bf16 %v1907_v3  ;;  %v1908_v42 = vunpack.i.l.bf16 %v1907_v3  ;;  %v1902_v45 = vpop.permute.xlu0 %1901 }
  0xec   :  { %v3757_v57 = vsel %vm2811_vm13, 4294967295, %v3756_v57  ;;  %v240_v58 = vsel %vm3758_vm1, %v1888_v63, %v1898_v49  ;;  %vm3759_vm7 = vmmov %vm3758_vm1 }
  0xed   :  { %v241_v59 = vsel %vm3759_vm7, %v1889_v62, %v1899_v48  ;;  %vm3629_vm11 = vmpackc.low %vm2767_vm8, %vm2759_vm2  ;;  %v238_v62 = vsel %vm3758_vm1, %v1898_v49, %v1893_v56  ;;  %v1903_v49 = vunpack.i.l.bf16 %v1902_v45  ;;  %vm3807_vm2 = vcmp.lt.s32.totalorder %v2566_v33, 127 }
  0xee   :  { %v1682_v60 = vpack.c.bf16 %v241_v59, %v240_v58  ;;  %vm3761_vm4 = vmmov %vm3758_vm1 }
  0xef   :  { %v239_v61 = vsel %vm3761_vm4, %v1899_v48, %v1894_v55  ;;  %vm3762_vm7 = vmmov %vm3758_vm1 }
  0xf0   :  { %v244_v63 = vsel %vm3762_vm7, %v1893_v56, %v1883_v34  ;;  %vm3628_vm14 = vmpackc.low %vm2795_vm12, %vm2778_vm10  ;;  %v1679_v38 = vpack.c.bf16 %v239_v61, %v238_v62  ;;  %v1904_v34 = vunpack.i.h.bf16 %v1902_v45  ;;  %vm3766_vm7 = vcmp.ge.s32.totalorder %v2512_v14, 1  ;;  %v1912_v62 = vpop.permute.xlu0 %1911 }
  0xf1   :  { %vm3763_vm9 = vmmov %vm3758_vm1  ;;  %v3768_v56 = vmov 0  ;;  %v1913_v3 = vunpack.i.l.bf16 %v1912_v62  ;;  %v1639_v45 = vpack.c.bf16 %v2470_v9, %v2468_v8  ;;  %v3780_v8 = vmov 0 }
  0xf2   :  { %v245_v10 = vsel %vm3763_vm9, %v1894_v55, %v1884_v12  ;;  %vm3630_vm4 = vmpackc.low %vm2811_vm13, %vm2803_vm3  ;;  %1681 = vmatprep.subr.msk.bf16.mxu1 %vm3628_vm14, %v1679_v38  ;;  %vm3764_vm9 = vcmp.lt.s32.totalorder %v2566_v33, 1  ;;  %v1917_v55 = vpop.permute.xlu1 %1916  ;;  %v3774_v38 = vmov 0  ;;  %vm3788_vm10 = vcmp.lt.s32.totalorder %v2516_v16, 15 }
  0xf3   :  { %v1630_v48 = vpack.c.bf16 %v245_v10, %v244_v63  ;;  %v300_v12 = vsel %vm3764_vm9, %v1904_v34, %v1909_v40  ;;  %vm3765_vm1 = vmmov %vm3764_vm9  ;;  %1684 = vmatpush1.bf16.msk.msra.mxu1 %vm3630_vm4, %v1682_v60  ;;  %vm3767_vm9 = vcmp.ge.s32.totalorder %v2516_v16, 1  ;;  %v1919_v59 = vunpack.i.h.bf16 %v1917_v55 }
  0xf4   :  { %v299_v52 = vsel %vm3765_vm1, %v1903_v49, %v1908_v42  ;;  %vm2868_vm14 = vmpackc.low %vm3767_vm9, %vm3766_vm7  ;;  %v1918_v61 = vunpack.i.l.bf16 %v1917_v55  ;;  %v1914_v63 = vunpack.i.h.bf16 %v1912_v62  ;;  %vm3772_vm7 = vcmp.ge.s32.totalorder %v2548_v25, 1 }
  0xf5   :  { %1632 = vmatpush1.bf16.msk.msra.mxu0 %vm3629_vm11, %v1630_v48  ;;  %v3769_v56 = vsel %vm2868_vm14, 4294967295, %v3768_v56  ;;  %v1633_v58 = vpack.c.bf16 %v300_v12, %v299_v52  ;;  %vm3770_vm11 = vmmov %vm3765_vm1  ;;  %vm3773_vm9 = vcmp.ge.s32.totalorder %v2554_v27, 1  ;;  %v301_v52 = vsel %vm3765_vm1, %v1913_v3, %v1903_v49 }
  0xf6   :  { %v297_v60 = vsel %vm3770_vm11, %v1908_v42, %v1918_v61  ;;  %vm3771_vm4 = vmmov %vm3765_vm1  ;;  %v1691_v42 = vpack.c.bf16 %v2454_v1, %v2452_v0  ;;  %v1927_v55 = vpop.permute.xlu1 %1926  ;;  %v3785_v49 = vmov 0 }
  0xf7   :  { %v298_v10 = vsel %vm3771_vm4, %v1909_v40, %v1919_v59  ;;  %1635 = vmatprep.subr.msk.bf16.mxu0 %vm2868_vm14, %v1633_v58  ;;  %vm2883_vm3 = vmpackc.low %vm3773_vm9, %vm3772_vm7  ;;  %vm3778_vm7 = vcmp.ge.s32.totalorder %v2524_v18, 1  ;;  %vm3779_vm9 = vcmp.ge.s32.totalorder %v2536_v22, 1  ;;  %v1929_v9 = vunpack.i.h.bf16 %v1927_v55 }
  0xf8   :  { %v3775_v38 = vsel %vm2883_vm3, 4294967295, %v3774_v38  ;;  %v1688_v48 = vpack.c.bf16 %v298_v10, %v297_v60  ;;  %vm3776_vm11 = vmmov %vm3765_vm1  ;;  %v1928_v58 = vunpack.i.l.bf16 %v1927_v55 }
  0xf9   :  { %v296_v40 = vsel %vm3776_vm11, %v1919_v59, %v1914_v63  ;;  %vm3777_vm4 = vmmov %vm3765_vm1  ;;  %v1922_v59 = vpop.permute.xlu0 %1921  ;;  %vm3783_vm11 = vcmp.ge.s32.totalorder %v2562_v30, 1 }
  0xfa   :  { %v295_v12 = vsel %vm3777_vm4, %v1918_v61, %v1913_v3  ;;  %vm2901_vm14 = vmpackc.low %vm3779_vm9, %vm3778_vm7  ;;  %vm3640_vm7 = vcmp.lt.s32.totalorder %v2510_v13, 15  ;;  %v1924_v62 = vunpack.i.h.bf16 %v1922_v59  ;;  %v1923_v3 = vunpack.i.l.bf16 %v1922_v59  ;;  %v1937_v10 = vpop.permute.xlu1 %1936 }
  0xfb   :  { %v3781_v8 = vsel %vm2901_vm14, 4294967295, %v3780_v8  ;;  %vm3782_vm13 = vmmov %vm3765_vm1  ;;  %v1685_v1 = vpack.c.bf16 %v296_v40, %v295_v12  ;;  %vm3784_vm1 = vcmp.ge.s32.totalorder %v2564_v31, 1  ;;  %v1641_v40 = vpack.c.bf16 %v2460_v4, %v2456_v2 }
  0xfc   :  { %v302_v0 = vsel %vm3782_vm13, %v1914_v63, %v1904_v34  ;;  %vm2911_vm4 = vmpackc.low %vm3784_vm1, %vm3783_vm11  ;;  %vm3787_vm13 = vcmp.lt.s32.totalorder %v2512_v14, 15  ;;  %v3789_v34 = vmov 0  ;;  %vm3791_vm11 = vcmp.lt.s32.totalorder %v2566_v33, 127 }
  0xfd   :  { %v3786_v49 = vsel %vm2911_vm4, 4294967295, %v3785_v49  ;;  %v1636_v61 = vpack.c.bf16 %v302_v0, %v301_v52  ;;  %1687 = vmatprep.subr.msk.bf16.mxu1 %vm2901_vm14, %v1685_v1  ;;  %vm2923_vm12 = vmpackc.low %vm3788_vm10, %vm3787_vm13  ;;  %v347_v63 = vsel %vm3791_vm11, %v1924_v62, %v1929_v9  ;;  %vm3793_vm10 = vcmp.lt.s32.totalorder %v2548_v25, 15  ;;  %v1932_v1 = vpop.permute.xlu0 %1931 }
  0xfe   :  { %v3790_v34 = vsel %vm2923_vm12, 4294967295, %v3789_v34  ;;  %vm3792_vm1 = vmmov %vm3791_vm11  ;;  %1690 = vmatpush1.bf16.msk.msra.mxu1 %vm2911_vm4, %v1688_v48  ;;  %vm3794_vm13 = vcmp.lt.s32.totalorder %v2554_v27, 15  ;;  %v3795_v12 = vmov 0  ;;  %v1939_v55 = vunpack.i.h.bf16 %v1937_v10 }
  0xff   :  { %v346_v60 = vsel %vm3792_vm1, %v1923_v3, %v1928_v58  ;;  %1638 = vmatpush1.bf16.msk.msra.mxu0 %vm2883_vm3, %v1636_v61  ;;  %vm2941_vm9 = vmpackc.low %vm3794_vm13, %vm3793_vm10  ;;  %v1938_v0 = vunpack.i.l.bf16 %v1937_v10  ;;  %1692 = vmatprep.subr.bf16.mxu1 %v1691_v42  ;;  %v1693_v48 = vpack.c.bf16 %v2464_v6, %v2462_v5  ;;  %vm3798_vm11 = vcmp.ge.s32.totalorder %v2512_v14, 1 }
 0x100   :  { %v3796_v12 = vsel %vm2941_vm9, 4294967295, %v3795_v12  ;;  %v1643_v52 = vpack.c.bf16 %v347_v63, %v346_v60  ;;  %1640 = vmatprep.subr.bf16.mxu0 %v1639_v45  ;;  %vm2951_vm1 = vmand %vm3640_vm7, %vm3798_vm11  ;;  %v3799_v2 = vmov 0  ;;  %v1934_v4 = vunpack.i.h.bf16 %v1932_v1  ;;  %v1947_v60 = vpop.permute.xlu1 %1946 }
 0x101   :  { %3797 = vst [vmem:[#allocation17_spill] sm:$0xff] %v3796_v12  ;;  %v3800_v2 = vsel %vm2951_vm1, 4294967295, %v3799_v2  ;;  %v1933_v59 = vunpack.i.l.bf16 %v1932_v1  ;;  %vm3802_vm4 = vcmp.ge.s32.totalorder %v2516_v16, 1  ;;  %vm3803_vm14 = vcmp.lt.s32.totalorder %v2514_v15, 15  ;;  %vm3808_vm11 = vmmov %vm3807_vm2 }
 0x102   :  { %3801 = vst [vmem:[#allocation18_spill] sm:$0xff] %v3800_v2  ;;  %vm2961_vm3 = vmand %vm3803_vm14, %vm3802_vm4  ;;  %v3804_v5 = vmov 0  ;;  %v344_v6 = vsel %vm3807_vm2, %v1928_v58, %v1938_v0  ;;  %v345_v45 = vsel %vm3808_vm11, %v1929_v9, %v1939_v55  ;;  %vm3809_vm7 = vcmp.lt.s32.totalorder %v2524_v18, 15  ;;  %1694 = vmatpush1.bf16.msra.mxu1 %v1693_v48 }
 0x103   :  { %v3805_v5 = vsel %vm2961_vm3, 4294967295, %v3804_v5  ;;  %vm3810_vm10 = vcmp.lt.s32.totalorder %v2536_v22, 15  ;;  %v3811_v42 = vmov 0  ;;  %vm3645_vm13 = vcmp.lt.s32.totalorder %v2546_v24, 15  ;;  %vm3814_vm4 = vmmov %vm3807_vm2  ;;  %1642 = vmatpush1.bf16.msra.mxu0 %v1641_v40  ;;  %v1942_v40 = vpop.permute.xlu0 %1941 }
 0x104   :  { %3806 = vst [vmem:[#allocation19_spill] sm:$0xff] %v3805_v5  ;;  %vm2973_vm8 = vmpackc.low %vm3810_vm10, %vm3809_vm7  ;;  %v1698_v61 = vpack.c.bf16 %v345_v45, %v344_v6  ;;  %v351_v63 = vsel %vm3814_vm4, %v1939_v55, %v1934_v4  ;;  %v348_v58 = vsel %vm3807_vm2, %v1933_v59, %v1923_v3  ;;  %vm3816_vm7 = vcmp.lt.s32.totalorder %v2562_v30, 15  ;;  %1645 = vmatprep.subr.msk.bf16.mxu0 %vm2923_vm12, %v1643_v52 }
 0x105   :  { %v3812_v42 = vsel %vm2973_vm8, 4294967295, %v3811_v42  ;;  %vm3815_vm11 = vmmov %vm3807_vm2  ;;  %vm3817_vm10 = vcmp.lt.s32.totalorder %v2564_v31, 15  ;;  %v3818_v10 = vmov 0  ;;  %v1949_v3 = vunpack.i.h.bf16 %v1947_v60 }
 0x106   :  { %3813 = vst [vmem:[#allocation20_spill] sm:$0xff] %v3812_v42  ;;  %v349_v9 = vsel %vm3815_vm11, %v1934_v4, %v1924_v62  ;;  %vm2989_vm15 = vmpackc.low %vm3817_vm10, %vm3816_vm7  ;;  %v1948_v62 = vunpack.i.l.bf16 %v1947_v60  ;;  %v1944_v6 = vunpack.i.h.bf16 %v1942_v40  ;;  %v1943_v45 = vunpack.i.l.bf16 %v1942_v40 }
 0x107   :  { %v3819_v10 = vsel %vm2989_vm15, 4294967295, %v3818_v10  ;;  %vm3821_vm14 = vmmov %vm3807_vm2  ;;  %v1646_v55 = vpack.c.bf16 %v349_v9, %v348_v58  ;;  %v3823_v52 = vmov 0  ;;  %vm3825_vm7 = vcmp.ge.s32.totalorder %v2554_v27, 1 }
 0x108   :  { %3820 = vst [vmem:[#allocation21_spill] sm:$0xff] %v3819_v10  ;;  %v350_v1 = vsel %vm3821_vm14, %v1938_v0, %v1933_v59  ;;  %vm3822_vm14 = vcmp.ge.s32.totalorder %v2548_v25, 1  ;;  %vm3826_vm10 = vcmp.lt.s32.totalorder %v2552_v26, 15  ;;  %v3827_v0 = vmov 0 }
 0x109   :  { %v1695_v4 = vpack.c.bf16 %v351_v63, %v350_v1  ;;  %vm3006_vm11 = vmand %vm3645_vm13, %vm3822_vm14  ;;  %vm3829_vm2 = vcmp.lt.s32.totalorder %v2566_v33, 113  ;;  %1648 = vmatpush1.bf16.msk.msra.mxu0 %vm2941_vm9, %v1646_v55  ;;  %v1957_v63 = vpop.permute.xlu1 %1956  ;;  %vm3831_vm14 = vcmp.ge.s32.totalorder %v2524_v18, 1  ;;  %v3833_v58 = vmov 0  ;;  %v1952_v55 = vpop.permute.xlu0 %1951 }
 0x10a   :  { %v3824_v52 = vsel %vm3006_vm11, 4294967295, %v3823_v52  ;;  %vm3014_vm12 = vmand %vm3826_vm10, %vm3825_vm7  ;;  %v388_v48 = vsel %vm3829_vm2, %v1944_v6, %v1949_v3  ;;  %vm3832_vm7 = vcmp.lt.s32.totalorder %v2522_v17, 15  ;;  %v1959_v60 = vunpack.i.h.bf16 %v1957_v63 }
 0x10b   :  { %v3828_v0 = vsel %vm3014_vm12, 4294967295, %v3827_v0  ;;  %vm3830_vm0 = vmmov %vm3829_vm2  ;;  %1697 = vmatprep.subr.msk.bf16.mxu1 %vm2973_vm8, %v1695_v4  ;;  %v1958_v1 = vunpack.i.l.bf16 %v1957_v63  ;;  %vm3837_vm13 = vcmp.lt.s32.totalorder %v2534_v21, 15  ;;  %v3838_v40 = vmov 0 }
 0x10c   :  { %v387_v59 = vsel %vm3830_vm0, %v1943_v45, %v1948_v62  ;;  %vm3031_vm10 = vmand %vm3832_vm7, %vm3831_vm14  ;;  %1700 = vmatpush1.bf16.msk.msra.mxu1 %vm2989_vm15, %v1698_v61  ;;  %vm3836_vm0 = vcmp.ge.s32.totalorder %v2536_v22, 1  ;;  %v1954_v4 = vunpack.i.h.bf16 %v1952_v55  ;;  %v1953_v42 = vunpack.i.l.bf16 %v1952_v55 }
 0x10d   :  { %v3834_v58 = vsel %vm3031_vm10, 4294967295, %v3833_v58  ;;  %v1649_v9 = vpack.c.bf16 %v388_v48, %v387_v59  ;;  %vm3042_vm4 = vmand %vm3837_vm13, %vm3836_vm0  ;;  %vm3840_vm14 = vcmp.ge.s32.totalorder %v2562_v30, 1  ;;  %vm3841_vm7 = vcmp.lt.s32.totalorder %v2556_v28, 15  ;;  %v1967_v2 = vpop.permute.xlu1 %1966  ;;  %v1962_v12 = vpop.permute.xlu0 %1961 }
 0x10e   :  { %3835 = vst [vmem:[#allocation22_spill] sm:$0xff] %v3834_v58  ;;  %v3839_v40 = vsel %vm3042_vm4, 4294967295, %v3838_v40  ;;  %vm3050_vm2 = vmand %vm3841_vm7, %vm3840_vm14  ;;  %v3842_v48 = vmov 0  ;;  %vm3844_vm15 = vcmp.lt.s32.totalorder %v2566_v33, 113  ;;  %vm3657_vm0 = vcmp.lt.s32.totalorder %v2566_v33, 112 }
 0x10f   :  { %v3843_v48 = vsel %vm3050_vm2, 4294967295, %v3842_v48  ;;  %v385_v61 = vsel %vm3844_vm15, %v1948_v62, %v1958_v1  ;;  %vm3845_vm8 = vmmov %vm3844_vm15  ;;  %vm3847_vm9 = vcmp.ge.s32.totalorder %v2564_v31, 1  ;;  %vm3848_vm14 = vcmp.lt.s32.totalorder %v2560_v29, 15 }
 0x110   :  { %v386_v59 = vsel %vm3845_vm8, %v1949_v3, %v1959_v60  ;;  %vm3846_vm13 = vmpackc.low %vm2961_vm3, %vm2951_vm1  ;;  %v3849_v63 = vmov 0  ;;  %v389_v55 = vsel %vm3845_vm8, %v1953_v42, %v1943_v45  ;;  %vm3918_vm3 = vcmp.lt.s32.totalorder %v2560_v29, 15 }
 0x111   :  { %1651 = vmatprep.subr.msk.bf16.mxu0 %vm3846_vm13, %v1649_v9  ;;  %vm3068_vm7 = vmand %vm3848_vm14, %vm3847_vm9  ;;  %v1704_v62 = vpack.c.bf16 %v386_v59, %v385_v61  ;;  %v1969_v61 = vunpack.i.h.bf16 %v1967_v2  ;;  %v1968_v59 = vunpack.i.l.bf16 %v1967_v2  ;;  %v3856_v2 = vmov 0 }
 0x112   :  { %v3850_v63 = vsel %vm3068_vm7, 4294967295, %v3849_v63  ;;  %vm3851_vm15 = vmmov %vm3845_vm8 }
 0x113   :  { %v392_v3 = vsel %vm3851_vm15, %v1959_v60, %v1954_v4  ;;  %vm3852_vm1 = vmmov %vm3845_vm8  ;;  %v1963_v60 = vunpack.i.l.bf16 %v1962_v12  ;;  %vm3854_vm15 = vcmp.lt.s32.totalorder %v2510_v13, 15  ;;  %vm3855_vm8 = vcmp.lt.s32.totalorder %v2514_v15, 15 }
 0x114   :  { %v390_v9 = vsel %vm3852_vm1, %v1954_v4, %v1944_v6  ;;  %vm3655_vm13 = vmpackc.low %vm3014_vm12, %vm3006_vm11  ;;  %v1964_v6 = vunpack.i.h.bf16 %v1962_v12 }
 0x115   :  { %vm3853_vm9 = vmmov %vm3852_vm1  ;;  %v1652_v10 = vpack.c.bf16 %v390_v9, %v389_v55  ;;  %v1972_v55 = vpop.permute.xlu0 %1971  ;;  %v3865_v9 = vmov 0 }
 0x116   :  { %v391_v5 = vsel %vm3853_vm9, %v1958_v1, %v1953_v42  ;;  %vm3656_vm14 = vmpackc.low %vm3042_vm4, %vm3031_vm10  ;;  %v445_v12 = vsel %vm3657_vm0, %v1964_v6, %v1969_v61  ;;  %v1977_v42 = vpop.permute.xlu1 %1976  ;;  %v1973_v58 = vunpack.i.l.bf16 %v1972_v55 }
 0x117   :  { %v1701_v45 = vpack.c.bf16 %v392_v3, %v391_v5  ;;  %vm3661_vm1 = vmpackc.low %vm3068_vm7, %vm3050_vm2  ;;  %1654 = vmatpush1.bf16.msk.msra.mxu0 %vm3655_vm13, %v1652_v10  ;;  %v444_v5 = vsel %vm3657_vm0, %v1963_v60, %v1968_v59  ;;  %vm3859_vm13 = vcmp.lt.s32.totalorder %v2546_v24, 15  ;;  %v3861_v10 = vmov 0 }
 0x118   :  { %vm3101_vm9 = vmpackc.low %vm3855_vm8, %vm3854_vm15  ;;  %vm3860_vm15 = vcmp.lt.s32.totalorder %v2552_v26, 15  ;;  %v1655_v1 = vpack.c.bf16 %v445_v12, %v444_v5  ;;  %v1979_v4 = vunpack.i.h.bf16 %v1977_v42  ;;  %v1978_v3 = vunpack.i.l.bf16 %v1977_v42 }
 0x119   :  { %v3857_v2 = vsel %vm3101_vm9, 4294967295, %v3856_v2  ;;  %1703 = vmatprep.subr.msk.bf16.mxu1 %vm3656_vm14, %v1701_v45  ;;  %vm3118_vm8 = vmpackc.low %vm3860_vm15, %vm3859_vm13  ;;  %vm3863_vm14 = vcmp.lt.s32.totalorder %v2512_v14, 15  ;;  %vm3864_vm0 = vcmp.lt.s32.totalorder %v2510_v13, 15  ;;  %v1974_v45 = vunpack.i.h.bf16 %v1972_v55 }
 0x11a   :  { %3858 = vst [vmem:[#allocation23_spill] sm:$0xff] %v3857_v2  ;;  %v3862_v10 = vsel %vm3118_vm8, 4294967295, %v3861_v10  ;;  %1706 = vmatpush1.bf16.msk.msra.mxu1 %vm3661_vm1, %v1704_v62  ;;  %vm3131_vm10 = vmand %vm3864_vm0, %vm3863_vm14  ;;  %vm3868_vm13 = vcmp.lt.s32.totalorder %v2516_v16, 15  ;;  %vm3869_vm15 = vcmp.lt.s32.totalorder %v2514_v15, 15  ;;  %v3870_v12 = vmov 0  ;;  %1657 = vmatprep.subr.msk.bf16.mxu0 %vm3101_vm9, %v1655_v1  ;;  %v1987_v5 = vpop.permute.xlu1 %1986 }
 0x11b   :  { %v3866_v9 = vsel %vm3131_vm10, 4294967295, %v3865_v9  ;;  %vm3139_vm4 = vmand %vm3869_vm15, %vm3868_vm13  ;;  %vm3873_vm1 = vcmp.lt.s32.totalorder %v2566_v33, 112  ;;  %vm3875_vm14 = vcmp.lt.s32.totalorder %v2522_v17, 15  ;;  %vm3876_vm7 = vcmp.lt.s32.totalorder %v2534_v21, 15 }
 0x11c   :  { %3867 = vst [vmem:[#allocation24_spill] sm:$0xff] %v3866_v9  ;;  %v3871_v12 = vsel %vm3139_vm4, 4294967295, %v3870_v12  ;;  %v442_v62 = vsel %vm3873_vm1, %v1968_v59, %v1978_v3  ;;  %vm3874_vm2 = vmmov %vm3873_vm1  ;;  %v3877_v14 = vmov 0  ;;  %vm3881_vm15 = vcmp.lt.s32.totalorder %v2556_v28, 15 }
 0x11d   :  { %3872 = vst [vmem:[#allocation25_spill] sm:$0xff] %v3871_v12  ;;  %v443_v13 = vsel %vm3874_vm2, %v1969_v61, %v1979_v4  ;;  %vm3154_vm11 = vmpackc.low %vm3876_vm7, %vm3875_vm14  ;;  %v446_v61 = vsel %vm3873_vm1, %v1973_v58, %v1963_v60  ;;  %vm3882_vm0 = vcmp.lt.s32.totalorder %v2560_v29, 15  ;;  %v3883_v42 = vmov 0 }
 0x11e   :  { %v3878_v14 = vsel %vm3154_vm11, 4294967295, %v3877_v14  ;;  %v1710_v15 = vpack.c.bf16 %v443_v13, %v442_v62  ;;  %vm3879_vm13 = vmmov %vm3873_vm1  ;;  %v1988_v62 = vunpack.i.l.bf16 %v1987_v5  ;;  %v1982_v13 = vpop.permute.xlu0 %1981  ;;  %v3889_v2 = vmov 0 }
 0x11f   :  { %v449_v16 = vsel %vm3879_vm13, %v1979_v4, %v1974_v45  ;;  %vm3880_vm2 = vmmov %vm3873_vm1  ;;  %v1989_v4 = vunpack.i.h.bf16 %v1987_v5  ;;  %v1984_v60 = vunpack.i.h.bf16 %v1982_v13  ;;  %vm3888_vm13 = vcmp.lt.s32.totalorder %v2546_v24, 15 }
 0x120   :  { %v447_v59 = vsel %vm3880_vm2, %v1974_v45, %v1964_v6  ;;  %vm3168_vm9 = vmpackc.low %vm3882_vm0, %vm3881_vm15  ;;  %v1983_v45 = vunpack.i.l.bf16 %v1982_v13  ;;  %vm3887_vm0 = vcmp.lt.s32.totalorder %v2548_v25, 15  ;;  %vm3892_vm2 = vcmp.lt.s32.totalorder %v2554_v27, 15  ;;  %v515_v13 = vld [vmem:[#allocation9] sm:$0xff] }
 0x121   :  { %v3884_v42 = vsel %vm3168_vm9, 4294967295, %v3883_v42  ;;  %vm3886_vm7 = vmmov %vm3873_vm1  ;;  %v1658_v55 = vpack.c.bf16 %v447_v59, %v446_v61  ;;  %vm3893_vm15 = vcmp.lt.s32.totalorder %v2552_v26, 15  ;;  %vm3897_vm14 = vcmp.lt.s32.totalorder %v2566_v33, 111 }
 0x122   :  { %3885 = vst [vmem:[#allocation26_spill] sm:$0xff] %v3884_v42  ;;  %v448_v1 = vsel %vm3886_vm7, %v1978_v3, %v1973_v58  ;;  %vm3182_vm1 = vmand %vm3888_vm13, %vm3887_vm0  ;;  %v3894_v58 = vmov 0  ;;  %v486_v25 = vsel %vm3897_vm14, %v1984_v60, %v1989_v4  ;;  %v1997_v3 = vpop.permute.xlu1 %1996  ;;  %vm3899_vm0 = vcmp.lt.s32.totalorder %v2524_v18, 15  ;;  %v1992_v59 = vpop.permute.xlu0 %1991 }
 0x123   :  { %v1707_v6 = vpack.c.bf16 %v449_v16, %v448_v1  ;;  %v3890_v2 = vsel %vm3182_vm1, 4294967295, %v3889_v2  ;;  %1660 = vmatpush1.bf16.msk.msra.mxu0 %vm3118_vm8, %v1658_v55  ;;  %vm3192_vm7 = vmand %vm3893_vm15, %vm3892_vm2  ;;  %vm3900_vm13 = vcmp.lt.s32.totalorder %v2522_v17, 15  ;;  %v3901_v26 = vmov 0 }
 0x124   :  { %3891 = vst [vmem:[#allocation27_spill] sm:$0xff] %v3890_v2  ;;  %v3895_v58 = vsel %vm3192_vm7, 4294967295, %v3894_v58  ;;  %vm3898_vm12 = vmmov %vm3897_vm14  ;;  %v1999_v16 = vunpack.i.h.bf16 %v1997_v3  ;;  %v1998_v61 = vunpack.i.l.bf16 %v1997_v3  ;;  %vm3905_vm14 = vcmp.lt.s32.totalorder %v2534_v21, 15 }
 0x125   :  { %3896 = vst [vmem:[#allocation28_spill] sm:$0xff] %v3895_v58  ;;  %v485_v24 = vsel %vm3898_vm12, %v1983_v45, %v1988_v62  ;;  %1709 = vmatprep.subr.msk.bf16.mxu1 %vm3154_vm11, %v1707_v6  ;;  %vm3206_vm8 = vmand %vm3900_vm13, %vm3899_vm0  ;;  %vm3904_vm12 = vcmp.lt.s32.totalorder %v2536_v22, 15  ;;  %v3906_v5 = vmov 0  ;;  %v1994_v17 = vunpack.i.h.bf16 %v1992_v59  ;;  %v518_v6 = vld [vmem:[#allocation9 + $0x18] sm:$0xff] }
 0x126   :  { %v3902_v26 = vsel %vm3206_vm8, 4294967295, %v3901_v26  ;;  %v1661_v27 = vpack.c.bf16 %v486_v25, %v485_v24  ;;  %1712 = vmatpush1.bf16.msk.msra.mxu1 %vm3168_vm9, %v1710_v15  ;;  %vm3216_vm2 = vmand %vm3905_vm14, %vm3904_vm12  ;;  %v1993_v18 = vunpack.i.l.bf16 %v1992_v59  ;;  %vm3909_vm15 = vcmp.lt.s32.totalorder %v2562_v30, 15 }
 0x127   :  { %3903 = vst [vmem:[#allocation29_spill] sm:$0xff] %v3902_v26  ;;  %v3907_v5 = vsel %vm3216_vm2, 4294967295, %v3906_v5  ;;  %vm3910_vm0 = vcmp.lt.s32.totalorder %v2556_v28, 15  ;;  %v3911_v1 = vmov 0  ;;  %vm3914_vm9 = vcmp.lt.s32.totalorder %v2566_v33, 111  ;;  %vm3916_vm12 = vmpackc.low %vm3139_vm4, %vm3131_vm10 }
 0x128   :  { %3908 = vst [vmem:[#allocation30_spill] sm:$0xff] %v3907_v5  ;;  %vm3224_vm13 = vmand %vm3910_vm0, %vm3909_vm15  ;;  %v483_v15 = vsel %vm3914_vm9, %v1988_v62, %v1998_v61  ;;  %1663 = vmatprep.subr.msk.bf16.mxu0 %vm3916_vm12, %v1661_v27  ;;  %vm3917_vm14 = vcmp.lt.s32.totalorder %v2564_v31, 15  ;;  %v3919_v22 = vmov 0 }
 0x129   :  { %v3912_v1 = vsel %vm3224_vm13, 4294967295, %v3911_v1  ;;  %vm3915_vm11 = vmmov %vm3914_vm9 }
 0x12a   :  { %3913 = vst [vmem:[#allocation31_spill] sm:$0xff] %v3912_v1  ;;  %v484_v21 = vsel %vm3915_vm11, %v1989_v4, %v1999_v16  ;;  %vm3241_vm15 = vmand %vm3918_vm3, %vm3917_vm14 }
 0x12b   :  { %v3920_v22 = vsel %vm3241_vm15, 4294967295, %v3919_v22  ;;  %vm3922_vm0 = vmmov %vm3914_vm9  ;;  %v1716_v31 = vpack.c.bf16 %v484_v21, %v483_v15 }
 0x12c   :  { %3921 = vst [vmem:[#allocation32_spill] sm:$0xff] %v3920_v22  ;;  %v490_v28 = vsel %vm3922_vm0, %v1999_v16, %v1994_v17  ;;  %vm3923_vm9 = vmmov %vm3922_vm0 }
 0x12d   :  { %v487_v30 = vsel %vm3923_vm9, %v1993_v18, %v1983_v45  ;;  %vm3924_vm11 = vmmov %vm3922_vm0  ;;  %vm3926_vm9 = vcmask 130048  }
 0x12e   :  { %v488_v55 = vsel %vm3924_vm11, %v1994_v17, %v1984_v60  ;;  %vm3683_vm12 = vmpackc.low %vm3192_vm7, %vm3182_vm1  ;;  %v517_v60 = vld [vmem:[#allocation9 + $0x10] sm:$0xff] }
 0x12f   :  { %vm3925_vm3 = vmmov %vm3922_vm0  ;;  %v1664_v4 = vpack.c.bf16 %v488_v55, %v487_v30 }
 0x130   :  { %v489_v29 = vsel %vm3925_vm3, %v1998_v61, %v1993_v18  ;;  %vm3682_vm14 = vmpackc.low %vm3216_vm2, %vm3206_vm8 }
 0x131   :  { %v1713_v62 = vpack.c.bf16 %v490_v28, %v489_v29  ;;  %vm3681_vm0 = vmpackc.low %vm3241_vm15, %vm3224_vm13  ;;  %1666 = vmatpush1.bf16.msk.msra.mxu0 %vm3683_vm12, %v1664_v4  ;;  %vm3949_vm13 = vnez %v3698_v47 }
 0x132   :  { %vm3927_vm11 = vmmov %vm3926_vm9 }
 0x133   :  { %1715 = vmatprep.subr.msk.bf16.mxu1 %vm3682_vm14, %v1713_v62  ;;  %vm3928_vm3 = vmmov %vm3926_vm9 }
 0x134   :  { %1718 = vmatpush1.bf16.msk.msra.mxu1 %vm3681_vm0, %v1716_v31  ;;  %663 = vmatmul.mubr.f32.vlgmr.msra.gmra.mrb[0].mxu0 %v515_v13 }
 0x135   :  { %1480 = vmatprep.mubr.msk.f32.mxu0 %vm3926_vm9, %v518_v6  ;;  %vm3929_vm9 = vmmov %vm3928_vm3 }
 0x137   :  { %740 = vmatmul.mubr.f32.vlgmr.msra.gmra.mrb[0].mxu1 %v515_v13 }
 0x138   :  { %1482 = vmatprep.mubr.msk.f32.mxu1 %vm3927_vm11, %v518_v6  ;;  %669 = vmatmul.mubr.f32.gmra.mrb[2].mxu0 %v517_v60  ;;  %vm3930_vm11 = vcmp.lt.s32.totalorder %v2566_v33, 17 }
 0x13b   :  { %746 = vmatmul.mubr.f32.gmra.mrb[2].mxu1 %v517_v60 }
 0x207   :  { %v664_v45 = vpop.f32.mrb[0].mxu0 }
 0x208   :  { %v762_v25 = vmul.f32 %v664_v45, %v664_v45  ;;  %v666_v24 = vpop.f32.mrb[1].mxu0 }
 0x209   :  { %v752_v3 = vadd.f32 %v666_v24, %v664_v45  ;;  %v763_v27 = vmul.f32 %v666_v24, %v666_v24 }
 0x20a   :  { %v741_v16 = vpop.f32.mrb[0].mxu1 }
 0x20b   :  { %v764_v61 = vmul.f32 %v741_v16, %v741_v16  ;;  %v743_v59 = vpop.f32.mrb[1].mxu1  ;;  %v670_v17 = vpop.f32.mrb[2].mxu0  ;;  %v753_v18 = vadd.f32 %v752_v3, %v741_v16  ;;  %v770_v15 = vadd.f32 %v763_v27, %v762_v25 }
 0x20c   :  { %v766_v21 = vmul.f32 %v670_v17, %v670_v17  ;;  %v672_v28 = vpop.f32.mrb[3].mxu0  ;;  %v765_v30 = vmul.f32 %v743_v59, %v743_v59 }
 0x20d   :  { %v757_v55 = vadd.f32 %v672_v28, %v670_v17  ;;  %v767_v31 = vmul.f32 %v672_v28, %v672_v28  ;;  %v754_v4 = vadd.f32 %v753_v18, %v743_v59  ;;  %v771_v62 = vadd.f32 %v770_v15, %v764_v61 }
 0x20e   :  { %v747_v29 = vpop.f32.mrb[2].mxu1 }
 0x20f   :  { %v768_v13 = vmul.f32 %v747_v29, %v747_v29  ;;  %v749_v6 = vpop.f32.mrb[3].mxu1  ;;  %755 = vadd.xlane.f32.xlu0 %v754_v4  ;;  %v772_v60 = vadd.f32 %v771_v62, %v765_v30  ;;  %v758_v1 = vadd.f32 %v757_v55, %v747_v29  ;;  %v775_v26 = vadd.f32 %v767_v31, %v766_v21 }
 0x210   :  { %v769_v22 = vmul.f32 %v749_v6, %v749_v6 }
 0x211   :  { %v759_v5 = vadd.f32 %v758_v1, %v749_v6  ;;  %v776_v2 = vadd.f32 %v775_v26, %v768_v13 }
 0x213   :  { %773 = vadd.xlane.f32.xlu0 %v772_v60  ;;  %760 = vadd.xlane.f32.xlu1 %v759_v5  ;;  %v777_v25 = vadd.f32 %v776_v2, %v769_v22 }
 0x217   :  { %778 = vadd.xlane.f32.xlu0 %v777_v25 }
 0x29c   :  { %v756_v3 = vpop.xlane.xlu0 %755 }
 0x29d   :  { %v780_v27 = vmul.f32 0.001953125, %v756_v3 }
 0x29f   :  { %v784_v12 = vmul.f32 %v780_v27, %v780_v27  ;;  %v788_v5 = vsub.f32 %v664_v45, %v780_v27  ;;  %v789_v2 = vsub.f32 %v666_v24, %v780_v27  ;;  %v791_v22 = vsub.f32 %v743_v59, %v780_v27 }
 0x2a0   :  { %v774_v58 = vpop.xlane.xlu0 %773  ;;  %v761_v9 = vpop.xlane.xlu1 %760  ;;  %v790_v31 = vsub.f32 %v741_v16, %v780_v27 }
 0x2a1   :  { %v782_v18 = vmul.f32 0.001953125, %v774_v58  ;;  %v781_v61 = vmul.f32 0.001953125, %v761_v9 }
 0x2a3   :  { %v786_v15 = vsub.f32 %v782_v18, %v784_v12  ;;  %v785_v55 = vmul.f32 %v781_v61, %v781_v61  ;;  %v792_v25 = vsub.f32 %v670_v17, %v781_v61  ;;  %v793_v58 = vsub.f32 %v672_v28, %v781_v61 }
 0x2a4   :  { %v779_v42 = vpop.xlane.xlu0 %778  ;;  %v794_v9 = vsub.f32 %v747_v29, %v781_v61  ;;  %v795_v12 = vsub.f32 %v749_v6, %v781_v61 }
 0x2a5   :  { %v796_v4 = vadd.f32 1e-05, %v786_v15  ;;  %v783_v30 = vmul.f32 0.001953125, %v779_v42 }
 0x2a7   :  { %2160 = vrsqrt.f32 %v796_v4  ;;  %v787_v21 = vsub.f32 %v783_v30, %v785_v55 }
 0x2a9   :  { %v797_v1 = vadd.f32 1e-05, %v787_v21 }
 0x2ab   :  { %2162 = vrsqrt.f32 %v797_v1 }
 0x2b1   :  { %v2161_v26 = vpop.eup %2160 }
 0x2b2   :  { %v801_v62 = vmul.f32 %v2161_v26, %v789_v2  ;;  %v800_v13 = vmul.f32 %v2161_v26, %v788_v5  ;;  %v803_v60 = vmul.f32 %v2161_v26, %v791_v22  ;;  %v802_v18 = vmul.f32 %v2161_v26, %v790_v31  ;;  %v1145_v22 = vld [vmem:[#allocation11 + $0x8] sm:$0xff] }
 0x2b3   :  { %1483 = vmatprep.mubr.msk.f32.mxu0 %vm3928_vm3, %v1145_v22  ;;  %1485 = vmatprep.mubr.msk.f32.mxu1 %vm3929_vm9, %v1145_v22  ;;  %vm3931_vm3 = vmmov %vm3930_vm11 }
 0x2b4   :  { %v809_v55 = vmax.f32 %v801_v62, 0.0  ;;  %v808_v21 = vmax.f32 %v800_v13, 0.0  ;;  %v811_v1 = vmax.f32 %v803_v60, 0.0  ;;  %v810_v27 = vmax.f32 %v802_v18, 0.0  ;;  %vm3932_vm9 = vmpackc.low %vm2542_vm6, %vm2530_vm5 }
 0x2b5   :  { %v2163_v3 = vpop.eup %2162  ;;  %vm3933_vm0 = vmmov %vm3931_vm3 }
 0x2b6   :  { %v805_v42 = vmul.f32 %v2163_v3, %v793_v58  ;;  %v804_v15 = vmul.f32 %v2163_v3, %v792_v25  ;;  %v807_v4 = vmul.f32 %v2163_v3, %v795_v12  ;;  %v806_v30 = vmul.f32 %v2163_v3, %v794_v9  ;;  %vm3934_vm14 = vmmov %vm3933_vm0 }
 0x2b7   :  { %vm3938_vm5 = vmmov %vm3933_vm0 }
 0x2b8   :  { %v813_v45 = vmax.f32 %v805_v42, 0.0  ;;  %v812_v24 = vmax.f32 %v804_v15, 0.0  ;;  %v815_v59 = vmax.f32 %v807_v4, 0.0  ;;  %v814_v16 = vmax.f32 %v806_v30, 0.0  ;;  %vm3939_vm6 = vmmov %vm3933_vm0 }
 0x2ba   :  { %v2005_v5 = vpack.i.bf16 %v813_v45, %v809_v55  ;;  %v2000_v2 = vpack.i.bf16 %v812_v24, %v808_v21  ;;  %v2010_v17 = vpack.i.bf16 %v815_v59, %v811_v1  ;;  %v2015_v28 = vpack.i.bf16 %v814_v16, %v810_v27 }
 0x2bb   :  { %v3286_v29 = vpack.c.bf16 %v813_v45, %v809_v55  ;;  %v3288_v6 = vpack.c.bf16 %v812_v24, %v808_v21  ;;  %v3290_v61 = vpack.c.bf16 %v815_v59, %v811_v1  ;;  %v3292_v26 = vpack.c.bf16 %v814_v16, %v810_v27 }
 0x2bc   :  { %2006 = vrot.lane.b32.xlu0 %v2005_v5, %s2325_s4  ;;  %2001 = vrot.lane.b32.xlu1 %v2000_v2, %s2325_s4 }
 0x2c0   :  { %2021 = vrot.lane.b32.xlu0 %v2000_v2, %s2321_s17  ;;  %2011 = vrot.lane.b32.xlu1 %v2010_v17, %s2325_s4 }
 0x2c4   :  { %2031 = vrot.lane.b32.xlu0 %v2010_v17, %s2321_s17  ;;  %2016 = vrot.lane.b32.xlu1 %v2015_v28, %s2325_s4 }
 0x2c8   :  { %2041 = vrot.lane.b32.xlu0 %v2000_v2, %s2326_s1  ;;  %2026 = vrot.lane.b32.xlu1 %v2005_v5, %s2321_s17 }
 0x2cc   :  { %2051 = vrot.lane.b32.xlu0 %v2010_v17, %s2326_s1  ;;  %2036 = vrot.lane.b32.xlu1 %v2015_v28, %s2321_s17  ;;  %s2332_s17 = smov [#allocation12]  }
 0x2cd   :  { %s1465_s12 = sshll.u32 %s2332_s17, 4  ;;  %s1466_s12 = int_to_ptr.vmem [resolvable:$true] %s1465_s12 }
 0x2ce   :  { %s2286_s13 = scalar_lea.vmem %s1466_s12, 1024  ;;  %p2291_p13 = scmp.lt.s32.totalorder %s1466_s12, %s1466_s12 }
 0x2cf   :  { %p2287_p12 = scmp.ne.s32.totalorder %s1466_s12, %s2286_s13  ;;  %p2292_p0 = scmp.lt.s32.totalorder %s2286_s13, %s2286_s13 }
 0x2d0   :  { %2061 = vrot.lane.b32.xlu0 %v2000_v2, %s2327_s3  ;;  %2046 = vrot.lane.b32.xlu1 %v2005_v5, %s2326_s1 }
 0x2d1   :  { %p2293_p1 = por %p2292_p0, %p2291_p13 }
 0x2d3   :  { %p2294_p2 = pnand %p2293_p1, %p2287_p12 }
 0x2d4   :  { %2071 = vrot.lane.b32.xlu0 %v2010_v17, %s2327_s3  ;;  %2056 = vrot.lane.b32.xlu1 %v2015_v28, %s2326_s1 }
 0x2d8   :  { %2081 = vrot.lane.b32.xlu0 %v2005_v5, %s2328_s21  ;;  %2066 = vrot.lane.b32.xlu1 %v2005_v5, %s2327_s3 }
 0x2dc   :  { %2091 = vrot.lane.b32.xlu0 %v2000_v2, %s2328_s21  ;;  %2076 = vrot.lane.b32.xlu1 %v2015_v28, %s2327_s3 }
 0x2e0   :  { %2101 = vrot.lane.b32.xlu0 %v2005_v5, %s2329_s9  ;;  %2086 = vrot.lane.b32.xlu1 %v2015_v28, %s2328_s21 }
 0x2e4   :  { %2111 = vrot.lane.b32.xlu0 %v2000_v2, %s2329_s9  ;;  %2096 = vrot.lane.b32.xlu1 %v2010_v17, %s2328_s21 }
 0x2e8   :  { %2121 = vrot.lane.b32.xlu0 %v2005_v5, %s2330_s10  ;;  %2106 = vrot.lane.b32.xlu1 %v2015_v28, %s2329_s9 }
 0x2ec   :  { %2131 = vrot.lane.b32.xlu0 %v2000_v2, %s2330_s10  ;;  %2116 = vrot.lane.b32.xlu1 %v2010_v17, %s2329_s9 }
 0x2f0   :  { %2141 = vrot.lane.b32.xlu0 %v2005_v5, %s2331_s11  ;;  %2126 = vrot.lane.b32.xlu1 %v2015_v28, %s2330_s10 }
 0x2f4   :  { %2151 = vrot.lane.b32.xlu0 %v2000_v2, %s2331_s11  ;;  %2136 = vrot.lane.b32.xlu1 %v2010_v17, %s2330_s10 }
 0x2f8   :  { %2146 = vrot.lane.b32.xlu1 %v2015_v28, %s2331_s11 }
 0x2fc   :  { %2156 = vrot.lane.b32.xlu1 %v2010_v17, %s2331_s11 }
 0x32e   :  { %v2007_v31 = vpop.permute.xlu0 %2006  ;;  %v2002_v62 = vpop.permute.xlu1 %2001 }
 0x32f   :  { %v2009_v13 = vunpack.i.h.bf16 %v2007_v31  ;;  %v2008_v60 = vunpack.i.l.bf16 %v2007_v31  ;;  %v2004_v25 = vunpack.i.h.bf16 %v2002_v62  ;;  %v2003_v58 = vunpack.i.l.bf16 %v2002_v62 }
 0x331   :  { %v837_v9 = vsel %vm3930_vm11, %v2004_v25, %v2009_v13  ;;  %v836_v12 = vsel %vm3931_vm3, %v2003_v58, %v2008_v60  ;;  %vm3935_vm11 = vnez %v3696_v43  ;;  %vm3936_vm3 = vnez %v3694_v41 }
 0x332   :  { %v1719_v3 = vpack.c.bf16 %v837_v9, %v836_v12  ;;  %v2022_v18 = vpop.permute.xlu0 %2021  ;;  %v2012_v42 = vpop.permute.xlu1 %2011  ;;  %vm3937_vm12 = vmpackc.low %vm3935_vm11, %vm3936_vm3  ;;  %vm3943_vm11 = vnez %v3692_v36  ;;  %vm3944_vm3 = vnez %v3690_v35 }
 0x333   :  { %v2014_v15 = vunpack.i.h.bf16 %v2012_v42  ;;  %v2013_v4 = vunpack.i.l.bf16 %v2012_v42  ;;  %v2024_v28 = vunpack.i.h.bf16 %v2022_v18  ;;  %v2023_v41 = vunpack.i.l.bf16 %v2022_v18 }
 0x334   :  { %1721 = vmatprep.subr.msk.bf16.mxu0 %vm3932_vm9, %v1719_v3 }
 0x335   :  { %v838_v30 = vsel %vm3933_vm0, %v2013_v4, %v2003_v58  ;;  %v839_v55 = vsel %vm3934_vm14, %v2014_v15, %v2004_v25  ;;  %vm3940_vm14 = vmmov %vm3933_vm0 }
 0x336   :  { %v1722_v21 = vpack.c.bf16 %v839_v55, %v838_v30  ;;  %v2032_v1 = vpop.permute.xlu0 %2031  ;;  %v2017_v45 = vpop.permute.xlu1 %2016 }
 0x337   :  { %v2019_v24 = vunpack.i.h.bf16 %v2017_v45  ;;  %v2018_v59 = vunpack.i.l.bf16 %v2017_v45  ;;  %v2034_v20 = vunpack.i.h.bf16 %v2032_v1  ;;  %v2033_v23 = vunpack.i.l.bf16 %v2032_v1 }
 0x338   :  { %1724 = vmatpush1.bf16.msk.msra.mxu0 %vm3937_vm12, %v1722_v21  ;;  %vm3941_vm12 = vcmp.lt.s32.totalorder %v2566_v33, 16 }
 0x339   :  { %v835_v16 = vsel %vm3938_vm5, %v2009_v13, %v2019_v24  ;;  %v832_v27 = vsel %vm3939_vm6, %v2018_v59, %v2013_v4  ;;  %v833_v5 = vsel %vm3940_vm14, %v2019_v24, %v2014_v15  ;;  %v834_v2 = vsel %vm3933_vm0, %v2008_v60, %v2018_v59  ;;  %vm3942_vm9 = vmmov %vm3941_vm12 }
 0x33a   :  { %v2042_v17 = vpop.permute.xlu0 %2041  ;;  %v2027_v43 = vpop.permute.xlu1 %2026  ;;  %v1771_v22 = vpack.c.bf16 %v833_v5, %v832_v27  ;;  %v1774_v31 = vpack.c.bf16 %v835_v16, %v834_v2  ;;  %v878_v13 = vsel %vm3941_vm12, %v2033_v23, %v2023_v41  ;;  %v879_v58 = vsel %vm3942_vm9, %v2034_v20, %v2024_v28  ;;  %vm3945_vm5 = vmpackc.low %vm3943_vm11, %vm3944_vm3 }
 0x33b   :  { %v2029_v62 = vunpack.i.h.bf16 %v2027_v43  ;;  %v2028_v25 = vunpack.i.l.bf16 %v2027_v43  ;;  %vm3946_vm6 = vmmov %vm3942_vm9  ;;  %vm3948_vm0 = vnez %v3700_v50  ;;  %v1728_v42 = vpack.c.bf16 %v879_v58, %v878_v13 }
 0x33c   :  { %1773 = vmatprep.subr.msk.bf16.mxu1 %vm3945_vm5, %v1771_v22  ;;  %vm3947_vm14 = vmmov %vm3946_vm6  ;;  %vm3953_vm3 = vnez %v3704_v19  ;;  %v2044_v45 = vunpack.i.h.bf16 %v2042_v17  ;;  %v2043_v24 = vunpack.i.l.bf16 %v2042_v17 }
 0x33d   :  { %v877_v60 = vsel %vm3946_vm6, %v2024_v28, %v2029_v62  ;;  %v876_v9 = vsel %vm3947_vm14, %v2023_v41, %v2028_v25  ;;  %vm3950_vm12 = vmpackc.low %vm3948_vm0, %vm3949_vm13  ;;  %vm3957_vm14 = vcmp.lt.s32.totalorder %v2566_v33, 15 }
 0x33e   :  { %1776 = vmatpush1.bf16.msk.msra.mxu1 %vm3950_vm12, %v1774_v31  ;;  %v2052_v12 = vpop.permute.xlu0 %2051  ;;  %v2037_v3 = vpop.permute.xlu1 %2036  ;;  %v1725_v18 = vpack.c.bf16 %v877_v60, %v876_v9  ;;  %vm3951_vm9 = vmmov %vm3946_vm6  ;;  %vm3959_vm12 = vnez %v3723_v51 }
 0x33f   :  { %v2039_v36 = vunpack.i.h.bf16 %v2037_v3  ;;  %v2038_v35 = vunpack.i.l.bf16 %v2037_v3  ;;  %v2054_v15 = vunpack.i.h.bf16 %v2052_v12  ;;  %v2053_v4 = vunpack.i.l.bf16 %v2052_v12  ;;  %vm3952_vm11 = vmmov %vm3946_vm6 }
 0x340   :  { %1727 = vmatprep.subr.msk.bf16.mxu0 %vm3953_vm3, %v1725_v18  ;;  %vm3954_vm13 = vmmov %vm3946_vm6  ;;  %vm3962_vm3 = vnez %v3729_v54 }
 0x341   :  { %v873_v30 = vsel %vm3951_vm9, %v2039_v36, %v2034_v20  ;;  %v875_v55 = vsel %vm3952_vm11, %v2029_v62, %v2039_v36  ;;  %v872_v47 = vsel %vm3954_vm13, %v2038_v35, %v2033_v23  ;;  %vm3955_vm5 = vmmov %vm3946_vm6  ;;  %vm3956_vm6 = vnez %v3709_v32 }
 0x342   :  { %v874_v50 = vsel %vm3955_vm5, %v2028_v25, %v2038_v35  ;;  %1730 = vmatpush1.bf16.msk.msra.mxu0 %vm3956_vm6, %v1728_v42  ;;  %v2062_v21 = vpop.permute.xlu0 %2061  ;;  %v2047_v1 = vpop.permute.xlu1 %2046  ;;  %v1777_v59 = vpack.c.bf16 %v873_v30, %v872_v47  ;;  %v918_v19 = vsel %vm3957_vm14, %v2053_v4, %v2043_v24  ;;  %vm3958_vm0 = vmmov %vm3957_vm14  ;;  %vm3965_vm6 = vnez %v3719_v46 }
 0x343   :  { %v1780_v20 = vpack.c.bf16 %v875_v55, %v874_v50  ;;  %v2049_v16 = vunpack.i.h.bf16 %v2047_v1  ;;  %v2048_v27 = vunpack.i.l.bf16 %v2047_v1  ;;  %v919_v23 = vsel %vm3958_vm0, %v2054_v15, %v2044_v45  ;;  %vm3960_vm9 = vmmov %vm3958_vm0 }
 0x344   :  { %1779 = vmatprep.subr.msk.bf16.mxu1 %vm3959_vm12, %v1777_v59  ;;  %vm3961_vm11 = vmmov %vm3958_vm0  ;;  %v1734_v41 = vpack.c.bf16 %v919_v23, %v918_v19  ;;  %vm3966_vm14 = vnez %v3715_v39  ;;  %v2064_v9 = vunpack.i.h.bf16 %v2062_v21  ;;  %v2063_v46 = vunpack.i.l.bf16 %v2062_v21 }
 0x345   :  { %v917_v32 = vsel %vm3960_vm9, %v2044_v45, %v2049_v16  ;;  %v916_v5 = vsel %vm3961_vm11, %v2043_v24, %v2048_v27  ;;  %1782 = vmatpush1.bf16.msk.msra.mxu1 %vm3962_vm3, %v1780_v20  ;;  %vm3963_vm13 = vmmov %vm3958_vm0  ;;  %vm3970_vm11 = vnez %v3739_v7  ;;  %vm3971_vm3 = vnez %v3736_v11 }
 0x346   :  { %v2072_v2 = vpop.permute.xlu0 %2071  ;;  %v2057_v17 = vpop.permute.xlu1 %2056  ;;  %v1731_v43 = vpack.c.bf16 %v917_v32, %v916_v5  ;;  %vm3964_vm5 = vmmov %vm3958_vm0 }
 0x347   :  { %v2059_v28 = vunpack.i.h.bf16 %v2057_v17  ;;  %v2058_v22 = vunpack.i.l.bf16 %v2057_v17  ;;  %v2074_v31 = vunpack.i.h.bf16 %v2072_v2  ;;  %v2073_v62 = vunpack.i.l.bf16 %v2072_v2  ;;  %vm3967_vm0 = vmpackc.low %vm3965_vm6, %vm3966_vm14 }
 0x348   :  { %1733 = vmatprep.subr.msk.bf16.mxu0 %vm3967_vm0, %v1731_v43  ;;  %vm3968_vm12 = vmmov %vm3964_vm5  ;;  %vm3975_vm14 = vnez %v3749_v44  ;;  %vm3976_vm0 = vnez %v3743_v37 }
 0x349   :  { %v913_v51 = vsel %vm3963_vm13, %v2059_v28, %v2054_v15  ;;  %v915_v25 = vsel %vm3964_vm5, %v2049_v16, %v2059_v28  ;;  %v912_v54 = vsel %vm3968_vm12, %v2058_v22, %v2053_v4  ;;  %vm3969_vm9 = vmmov %vm3964_vm5  ;;  %vm3973_vm5 = vcmp.lt.s32.totalorder %v2566_v33, 1 }
 0x34a   :  { %v914_v13 = vsel %vm3969_vm9, %v2048_v27, %v2058_v22  ;;  %vm3972_vm13 = vmpackc.low %vm3970_vm11, %vm3971_vm3  ;;  %v2082_v58 = vpop.permute.xlu0 %2081  ;;  %v2067_v60 = vpop.permute.xlu1 %2066  ;;  %v1783_v12 = vpack.c.bf16 %v913_v51, %v912_v54  ;;  %v958_v36 = vsel %vm3973_vm5, %v2073_v62, %v2063_v46  ;;  %vm3980_vm3 = vnez %v3757_v57 }
 0x34b   :  { %1736 = vmatpush1.bf16.msk.msra.mxu0 %vm3972_vm13, %v1734_v41  ;;  %v1786_v39 = vpack.c.bf16 %v915_v25, %v914_v13  ;;  %v2069_v3 = vunpack.i.h.bf16 %v2067_v60  ;;  %v2068_v18 = vunpack.i.l.bf16 %v2067_v60  ;;  %vm3974_vm6 = vmmov %vm3973_vm5  ;;  %vm3981_vm13 = vnez %v3753_v53 }
 0x34c   :  { %v959_v42 = vsel %vm3974_vm6, %v2074_v31, %v2064_v9  ;;  %vm3977_vm12 = vmpackc.low %vm3975_vm14, %vm3976_vm0  ;;  %vm3984_vm0 = vnez %v3769_v56  ;;  %v2084_v24 = vunpack.i.h.bf16 %v2082_v58  ;;  %v2083_v59 = vunpack.i.l.bf16 %v2082_v58 }
 0x34d   :  { %1785 = vmatprep.subr.msk.bf16.mxu1 %vm3977_vm12, %v1783_v12  ;;  %vm3978_vm9 = vmmov %vm3973_vm5  ;;  %v1740_v30 = vpack.c.bf16 %v959_v42, %v958_v36  ;;  %v4002_v12 = vld [vmem:[#allocation20_spill] sm:$0xff] }
 0x34e   :  { %v957_v11 = vsel %vm3978_vm9, %v2064_v9, %v2069_v3  ;;  %vm3979_vm11 = vmmov %vm3973_vm5  ;;  %v2092_v35 = vpop.permute.xlu0 %2091  ;;  %v2077_v15 = vpop.permute.xlu1 %2076 }
 0x34f   :  { %v956_v7 = vsel %vm3979_vm11, %v2063_v46, %v2068_v18  ;;  %vm3982_vm5 = vmpackc.low %vm3980_vm3, %vm3981_vm13  ;;  %v2079_v44 = vunpack.i.h.bf16 %v2077_v15  ;;  %v2078_v37 = vunpack.i.l.bf16 %v2077_v15  ;;  %v2094_v55 = vunpack.i.h.bf16 %v2092_v35 }
 0x350   :  { %1788 = vmatpush1.bf16.msk.msra.mxu1 %vm3982_vm5, %v1786_v39  ;;  %v1737_v4 = vpack.c.bf16 %v957_v11, %v956_v7  ;;  %v2093_v47 = vunpack.i.l.bf16 %v2092_v35  ;;  %vm3983_vm14 = vmmov %vm3974_vm6  ;;  %vm3987_vm11 = vnez %v3775_v38  ;;  %vm3988_vm3 = vcmp.lt.s32.totalorder %v2566_v33, 127 }
 0x351   :  { %v953_v50 = vsel %vm3974_vm6, %v2079_v44, %v2074_v31  ;;  %v955_v21 = vsel %vm3983_vm14, %v2069_v3, %v2079_v44  ;;  %vm3985_vm12 = vmmov %vm3974_vm6  ;;  %vm3990_vm5 = vnez %v3781_v8  ;;  %v4006_v3 = vld [vmem:[#allocation21_spill] sm:$0xff] }
 0x352   :  { %1739 = vmatprep.subr.msk.bf16.mxu0 %vm3984_vm0, %v1737_v4  ;;  %v952_v53 = vsel %vm3985_vm12, %v2078_v37, %v2073_v62  ;;  %vm3986_vm9 = vmmov %vm3974_vm6  ;;  %v2102_v1 = vpop.permute.xlu0 %2101  ;;  %v2087_v45 = vpop.permute.xlu1 %2086  ;;  %v1004_v19 = vsel %vm3988_vm3, %v2093_v47, %v2083_v59  ;;  %vm3993_vm0 = vnez %v3786_v49 }
 0x353   :  { %v954_v57 = vsel %vm3986_vm9, %v2068_v18, %v2078_v37  ;;  %1742 = vmatpush1.bf16.msk.msra.mxu0 %vm3987_vm11, %v1740_v30  ;;  %v1789_v20 = vpack.c.bf16 %v953_v50, %v952_v53  ;;  %v2089_v27 = vunpack.i.h.bf16 %v2087_v45  ;;  %v2088_v56 = vunpack.i.l.bf16 %v2087_v45  ;;  %vm3989_vm13 = vmmov %vm3988_vm3  ;;  %v4010_v37 = vld [vmem:[#allocation19_spill] sm:$0xff] }
 0x354   :  { %v1792_v16 = vpack.c.bf16 %v955_v21, %v954_v57  ;;  %1744 = vmatprep.subr.bf16.mxu0 %v3286_v29  ;;  %v1005_v23 = vsel %vm3989_vm13, %v2094_v55, %v2084_v24  ;;  %vm3991_vm6 = vmmov %vm3988_vm3  ;;  %vm3996_vm11 = vnez %v3790_v34  ;;  %v2104_v25 = vunpack.i.h.bf16 %v2102_v1 }
 0x355   :  { %1791 = vmatprep.subr.msk.bf16.mxu1 %vm3990_vm5, %v1789_v20  ;;  %v1003_v38 = vsel %vm3991_vm6, %v2084_v24, %v2089_v27  ;;  %vm3992_vm14 = vmmov %vm3988_vm3  ;;  %v1750_v43 = vpack.c.bf16 %v1005_v23, %v1004_v19  ;;  %v2103_v54 = vunpack.i.l.bf16 %v2102_v1  ;;  %vm4000_vm6 = vcmp.lt.s32.totalorder %v2566_v33, 113 }
 0x356   :  { %v1002_v32 = vsel %vm3992_vm14, %v2083_v59, %v2088_v56  ;;  %1794 = vmatpush1.bf16.msk.msra.mxu1 %vm3993_vm0, %v1792_v16  ;;  %v2112_v29 = vpop.permute.xlu0 %2111  ;;  %v2097_v5 = vpop.permute.xlu1 %2096  ;;  %vm3994_vm12 = vmmov %vm3988_vm3  ;;  %vm4003_vm0 = vnez %v4002_v12 }
 0x357   :  { %1746 = vmatpush1.bf16.msra.mxu0 %v3288_v6  ;;  %v1747_v2 = vpack.c.bf16 %v1003_v38, %v1002_v32  ;;  %v2099_v17 = vunpack.i.h.bf16 %v2097_v5  ;;  %1796 = vmatprep.subr.bf16.mxu1 %v3290_v61  ;;  %v2098_v8 = vunpack.i.l.bf16 %v2097_v5  ;;  %v2114_v28 = vunpack.i.h.bf16 %v2112_v29  ;;  %vm3995_vm9 = vmmov %vm3988_vm3  ;;  %v3998_v61 = vld [vmem:[#allocation17_spill] sm:$0xff] }
 0x358   :  { %v2113_v41 = vunpack.i.l.bf16 %v2112_v29  ;;  %vm3997_vm13 = vmmov %vm3988_vm3  ;;  %vm3999_vm5 = vnez %v3998_v61 }
 0x359   :  { %v1007_v22 = vsel %vm3994_vm12, %v2099_v17, %v2094_v55  ;;  %v1001_v31 = vsel %vm3995_vm9, %v2089_v27, %v2099_v17  ;;  %1749 = vmatprep.subr.msk.bf16.mxu0 %vm3996_vm11, %v1747_v2  ;;  %v1000_v49 = vsel %vm3988_vm3, %v2088_v56, %v2098_v8  ;;  %v1006_v6 = vsel %vm3997_vm13, %v2098_v8, %v2093_v47  ;;  %vm4001_vm14 = vmmov %vm4000_vm6  ;;  %v4012_v55 = vld [vmem:[#allocation18_spill] sm:$0xff]  ;;  %v4032_v8 = vld [vmem:[#allocation23_spill] sm:$0xff] }
 0x35a   :  { %1798 = vmatpush1.bf16.msra.mxu1 %v3292_v26  ;;  %v2122_v62 = vpop.permute.xlu0 %2121  ;;  %v2107_v51 = vpop.permute.xlu1 %2106  ;;  %v1799_v13 = vpack.c.bf16 %v1007_v22, %v1006_v6  ;;  %v1802_v58 = vpack.c.bf16 %v1001_v31, %v1000_v49  ;;  %v1044_v9 = vsel %vm4000_vm6, %v2113_v41, %v2103_v54  ;;  %v1045_v46 = vsel %vm4001_vm14, %v2114_v28, %v2104_v25  ;;  %vm4004_vm12 = vmmov %vm4000_vm6 }
 0x35b   :  { %1752 = vmatpush1.bf16.msk.msra.mxu0 %vm3999_vm5, %v1750_v43  ;;  %v2109_v60 = vunpack.i.h.bf16 %v2107_v51  ;;  %v2108_v34 = vunpack.i.l.bf16 %v2107_v51  ;;  %vm4005_vm9 = vmmov %vm4000_vm6  ;;  %vm4007_vm11 = vnez %v4006_v3  ;;  %v1756_v7 = vpack.c.bf16 %v1045_v46, %v1044_v9 }
 0x35c   :  { %1801 = vmatprep.subr.msk.bf16.mxu1 %vm4003_vm0, %v1799_v13  ;;  %vm4008_vm3 = vmmov %vm4000_vm6  ;;  %vm4011_vm5 = vnez %v4010_v37  ;;  %vm4013_vm6 = vnez %v4012_v55  ;;  %v2124_v57 = vunpack.i.h.bf16 %v2122_v62  ;;  %v2123_v1 = vunpack.i.l.bf16 %v2122_v62  ;;  %v4042_v13 = vld [vmem:[#allocation26_spill] sm:$0xff] }
 0x35d   :  { %v1043_v26 = vsel %vm4004_vm12, %v2104_v25, %v2109_v60  ;;  %v1042_v39 = vsel %vm4005_vm9, %v2103_v54, %v2108_v34  ;;  %vm4009_vm13 = vmmov %vm4008_vm3  ;;  %vm4017_vm9 = vnez %v3828_v0  ;;  %v4023_v0 = vld [vmem:[#allocation22_spill] sm:$0xff] }
 0x35e   :  { %1804 = vmatpush1.bf16.msk.msra.mxu1 %vm4007_vm11, %v1802_v58  ;;  %v2132_v18 = vpop.permute.xlu0 %2131  ;;  %v2117_v36 = vpop.permute.xlu1 %2116  ;;  %v1753_v42 = vpack.c.bf16 %v1043_v26, %v1042_v39  ;;  %vm4014_vm14 = vmpackc.low %vm4011_vm5, %vm4013_vm6  ;;  %vm4018_vm11 = vnez %v3824_v52  ;;  %vm4022_vm6 = vnez %v3839_v40 }
 0x35f   :  { %v2119_v11 = vunpack.i.h.bf16 %v2117_v36  ;;  %v2118_v35 = vunpack.i.l.bf16 %v2117_v36  ;;  %v2134_v15 = vunpack.i.h.bf16 %v2132_v18  ;;  %v2133_v4 = vunpack.i.l.bf16 %v2132_v18  ;;  %vm4015_vm0 = vmmov %vm4008_vm3 }
 0x360   :  { %1755 = vmatprep.subr.msk.bf16.mxu0 %vm4014_vm14, %v1753_v42  ;;  %vm4016_vm12 = vmmov %vm4015_vm0  ;;  %vm4024_vm14 = vnez %v4023_v0  ;;  %v1144_v42 = vld [vmem:[#allocation11] sm:$0xff] }
 0x361   :  { %v1047_v44 = vsel %vm4008_vm3, %v2119_v11, %v2114_v28  ;;  %v1041_v30 = vsel %vm4009_vm13, %v2109_v60, %v2119_v11  ;;  %v1040_v47 = vsel %vm4015_vm0, %v2108_v34, %v2118_v35  ;;  %v1046_v50 = vsel %vm4016_vm12, %v2118_v35, %v2113_v41  ;;  %vm4019_vm3 = vmpackc.low %vm4017_vm9, %vm4018_vm11  ;;  %v1147_v35 = vld [vmem:[#allocation11 + $0x18] sm:$0xff] }
 0x362   :  { %1758 = vmatpush1.bf16.msk.msra.mxu0 %vm4019_vm3, %v1756_v7  ;;  %v2142_v21 = vpop.permute.xlu0 %2141  ;;  %v2127_v53 = vpop.permute.xlu1 %2126  ;;  %v1805_v45 = vpack.c.bf16 %v1047_v44, %v1046_v50  ;;  %v1808_v24 = vpack.c.bf16 %v1041_v30, %v1040_v47  ;;  %vm4020_vm13 = vcmp.lt.s32.totalorder %v2566_v33, 112  ;;  %vm4025_vm0 = vmpackc.low %vm4022_vm6, %vm4024_vm14  ;;  %vm4028_vm11 = vnez %v3850_v63  ;;  %v1146_v30 = vld [vmem:[#allocation11 + $0x10] sm:$0xff]  ;;  %v2171_v44 = vld [vmem:[#allocation3 + $0x18] sm:$0xff] }
 0x363   :  { %v2129_v59 = vunpack.i.h.bf16 %v2127_v53  ;;  %v2128_v20 = vunpack.i.l.bf16 %v2127_v53  ;;  %v1084_v16 = vsel %vm4020_vm13, %v2133_v4, %v2123_v1  ;;  %vm4021_vm5 = vmmov %vm4020_vm13  ;;  %vm4029_vm3 = vnez %v3843_v48 }
 0x364   :  { %v1085_v27 = vsel %vm4021_vm5, %v2134_v15, %v2124_v57  ;;  %1807 = vmatprep.subr.msk.bf16.mxu1 %vm4025_vm0, %v1805_v45  ;;  %vm4026_vm12 = vmmov %vm4021_vm5  ;;  %vm4033_vm14 = vnez %v4032_v8  ;;  %v2144_v48 = vunpack.i.h.bf16 %v2142_v21  ;;  %v2143_v63 = vunpack.i.l.bf16 %v2142_v21 }
 0x365   :  { %v1083_v52 = vsel %vm4026_vm12, %v2124_v57, %v2129_v59  ;;  %vm4027_vm9 = vmmov %vm4021_vm5  ;;  %v1762_v32 = vpack.c.bf16 %v1085_v27, %v1084_v16 }
 0x366   :  { %v1082_v56 = vsel %vm4027_vm9, %v2123_v1, %v2128_v20  ;;  %vm4030_vm13 = vmpackc.low %vm4028_vm11, %vm4029_vm3  ;;  %v2152_v19 = vpop.permute.xlu0 %2151  ;;  %v2137_v23 = vpop.permute.xlu1 %2136  ;;  %vm4036_vm9 = vnez %v3862_v10  ;;  %vm4037_vm11 = vcmp.lt.s32.totalorder %v2566_v33, 111  ;;  %v4057_v33 = vld [vmem:[#allocation31_spill] sm:$0xff] }
 0x367   :  { %1810 = vmatpush1.bf16.msk.msra.mxu1 %vm4030_vm13, %v1808_v24  ;;  %v1759_v38 = vpack.c.bf16 %v1083_v52, %v1082_v56  ;;  %v2139_v40 = vunpack.i.h.bf16 %v2137_v23  ;;  %v2154_v29 = vunpack.i.h.bf16 %v2152_v19  ;;  %v2153_v5 = vunpack.i.l.bf16 %v2152_v19  ;;  %vm4031_vm6 = vmmov %vm4021_vm5 }
 0x368   :  { %v2138_v2 = vunpack.i.l.bf16 %v2137_v23  ;;  %vm4034_vm0 = vmmov %vm4021_vm5 }
 0x369   :  { %v1087_v17 = vsel %vm4021_vm5, %v2139_v40, %v2134_v15  ;;  %v1081_v43 = vsel %vm4031_vm6, %v2129_v59, %v2139_v40  ;;  %1761 = vmatprep.subr.msk.bf16.mxu0 %vm4033_vm14, %v1759_v38  ;;  %vm4035_vm12 = vmmov %vm4034_vm0  ;;  %v1124_v62 = vsel %vm4037_vm11, %v2153_v5, %v2143_v63  ;;  %vm4041_vm6 = vnez %v3878_v14  ;;  %v2170_v15 = vld [vmem:[#allocation3 + $0x10] sm:$0xff] }
 0x36a   :  { %v1080_v28 = vsel %vm4034_vm0, %v2128_v20, %v2138_v2  ;;  %v1086_v41 = vsel %vm4035_vm12, %v2138_v2, %v2133_v4  ;;  %1764 = vmatpush1.bf16.msk.msra.mxu0 %vm4036_vm9, %v1762_v32  ;;  %v2147_v22 = vpop.permute.xlu1 %2146  ;;  %vm4038_vm3 = vmmov %vm4037_vm11  ;;  %vm4043_vm14 = vnez %v4042_v13 }
 0x36b   :  { %v1811_v31 = vpack.c.bf16 %v1087_v17, %v1086_v41  ;;  %v1814_v49 = vpack.c.bf16 %v1081_v43, %v1080_v28  ;;  %v2149_v6 = vunpack.i.h.bf16 %v2147_v22  ;;  %v2148_v61 = vunpack.i.l.bf16 %v2147_v22  ;;  %vm4039_vm13 = vmmov %vm4038_vm3 }
 0x36c   :  { %v1125_v51 = vsel %vm4038_vm3, %v2154_v29, %v2144_v48  ;;  %vm4040_vm5 = vmmov %vm4038_vm3 }
 0x36d   :  { %v1123_v25 = vsel %vm4039_vm13, %v2144_v48, %v2149_v6  ;;  %v1122_v54 = vsel %vm4040_vm5, %v2143_v63, %v2148_v61  ;;  %1813 = vmatprep.subr.msk.bf16.mxu1 %vm4041_vm6, %v1811_v31  ;;  %v1768_v60 = vpack.c.bf16 %v1125_v51, %v1124_v62  ;;  %vm4046_vm0 = vmpackc.low %vm3139_vm4, %vm3131_vm10  ;;  %vm4058_vm10 = vnez %v4057_v33 }
 0x36e   :  { %v1765_v10 = vpack.c.bf16 %v1123_v25, %v1122_v54  ;;  %1816 = vmatpush1.bf16.msk.msra.mxu1 %vm4043_vm14, %v1814_v49  ;;  %v2157_v58 = vpop.permute.xlu1 %2156  ;;  %vm4047_vm12 = vmmov %vm4038_vm3  ;;  %vm4060_vm6 = vcmask 130048  }
 0x36f   :  { %v2159_v34 = vunpack.i.h.bf16 %v2157_v58  ;;  %v2158_v9 = vunpack.i.l.bf16 %v2157_v58  ;;  %vm4048_vm9 = vmmov %vm4038_vm3 }
 0x370   :  { %1767 = vmatprep.subr.msk.bf16.mxu0 %vm4046_vm0, %v1765_v10  ;;  %vm4049_vm11 = vmmov %vm4038_vm3 }
 0x371   :  { %v1127_v26 = vsel %vm4047_vm12, %v2159_v34, %v2154_v29  ;;  %v1120_v14 = vsel %vm4048_vm9, %v2148_v61, %v2158_v9  ;;  %v1121_v39 = vsel %vm4049_vm11, %v2149_v6, %v2159_v34  ;;  %v1126_v3 = vsel %vm4038_vm3, %v2158_v9, %v2153_v5  ;;  %vm4052_vm13 = vmpackc.low %vm3192_vm7, %vm3182_vm1 }
 0x372   :  { %1770 = vmatpush1.bf16.msk.msra.mxu0 %vm4052_vm13, %v1768_v60  ;;  %v1817_v11 = vpack.c.bf16 %v1127_v26, %v1126_v3  ;;  %v1820_v7 = vpack.c.bf16 %v1121_v39, %v1120_v14  ;;  %vm4055_vm4 = vmpackc.low %vm3216_vm2, %vm3206_vm8 }
 0x373   :  { %vm4059_vm5 = vmpackc.low %vm3241_vm15, %vm4058_vm10 }
 0x374   :  { %1819 = vmatprep.subr.msk.bf16.mxu1 %vm4055_vm4, %v1817_v11  ;;  %vm4061_vm1 = vmmov %vm4060_vm6 }
 0x375   :  { %1291 = vmatmul.mubr.f32.vlgmr.msra.gmra.mrb[4].mxu0 %v1144_v42  ;;  %1822 = vmatpush1.bf16.msk.msra.mxu1 %vm4059_vm5, %v1820_v7  ;;  %v2169_v7 = vld [vmem:[#allocation3 + $0x8] sm:$0xff] }
 0x376   :  { %1484 = vmatprep.mubr.msk.f32.mxu0 %vm4060_vm6, %v1147_v35 }
 0x378   :  { %1368 = vmatmul.mubr.f32.vlgmr.msra.gmra.mrb[4].mxu1 %v1144_v42  ;;  %v2168_v42 = vld [vmem:[#allocation3] sm:$0xff] }
 0x379   :  { %1297 = vmatmul.mubr.f32.gmra.mrb[6].mxu0 %v1146_v30  ;;  %1486 = vmatprep.mubr.msk.f32.mxu1 %vm4061_vm1, %v1147_v35 }
 0x37c   :  { %1374 = vmatmul.mubr.f32.gmra.mrb[6].mxu1 %v1146_v30 }
 0x448   :  { %v1292_v37 = vpop.f32.mrb[4].mxu0 }
 0x449   :  { %v1390_v55 = vmul.f32 %v1292_v37, %v1292_v37  ;;  %v1294_v47 = vpop.f32.mrb[5].mxu0 }
 0x44a   :  { %v1380_v50 = vadd.f32 %v1294_v47, %v1292_v37  ;;  %v1391_v21 = vmul.f32 %v1294_v47, %v1294_v47 }
 0x44b   :  { %v1369_v53 = vpop.f32.mrb[4].mxu1 }
 0x44c   :  { %v3570_v57 = vpop.f32.mrb[6].mxu0  ;;  %v1398_v1 = vadd.f32 %v1391_v21, %v1390_v55  ;;  %v1392_v45 = vmul.f32 %v1369_v53, %v1369_v53  ;;  %v1371_v59 = vpop.f32.mrb[5].mxu1  ;;  %v1381_v16 = vadd.f32 %v1380_v50, %v1369_v53 }
 0x44d   :  { %v1394_v24 = vmul.f32 %v3570_v57, %v3570_v57  ;;  %v1300_v20 = vpop.f32.mrb[7].mxu0  ;;  %v1393_v52 = vmul.f32 %v1371_v59, %v1371_v59 }
 0x44e   :  { %v1385_v27 = vadd.f32 %v1300_v20, %v3570_v57  ;;  %v1395_v0 = vmul.f32 %v1300_v20, %v1300_v20  ;;  %v1382_v56 = vadd.f32 %v1381_v16, %v1371_v59  ;;  %v1399_v19 = vadd.f32 %v1398_v1, %v1392_v45  ;;  %v2172_v45 = vld [vmem:[#allocation3 + $0x20] sm:$0xff]  ;;  %v2174_v16 = vld [vmem:[#allocation3 + $0x30] sm:$0xff] }
 0x44f   :  { %v1375_v38 = vpop.f32.mrb[6].mxu1 }
 0x450   :  { %v1403_v23 = vadd.f32 %v1395_v0, %v1394_v24  ;;  %v1396_v40 = vmul.f32 %v1375_v38, %v1375_v38  ;;  %1383 = vadd.xlane.f32.xlu0 %v1382_v56  ;;  %v1377_v32 = vpop.f32.mrb[7].mxu1  ;;  %v1400_v29 = vadd.f32 %v1399_v19, %v1393_v52  ;;  %v1386_v5 = vadd.f32 %v1385_v27, %v1375_v38  ;;  %v2175_v0 = vld [vmem:[#allocation3 + $0x38] sm:$0xff] }
 0x451   :  { %v1397_v2 = vmul.f32 %v1377_v32, %v1377_v32 }
 0x452   :  { %v1387_v17 = vadd.f32 %v1386_v5, %v1377_v32  ;;  %v1404_v43 = vadd.f32 %v1403_v23, %v1396_v40 }
 0x454   :  { %1401 = vadd.xlane.f32.xlu0 %v1400_v29  ;;  %1388 = vadd.xlane.f32.xlu1 %v1387_v17  ;;  %v1405_v8 = vadd.f32 %v1404_v43, %v1397_v2 }
 0x458   :  { %1406 = vadd.xlane.f32.xlu0 %v1405_v8 }
 0x4dd   :  { %v1384_v48 = vpop.xlane.xlu0 %1383 }
 0x4de   :  { %v1408_v63 = vmul.f32 0.001953125, %v1384_v48 }
 0x4e0   :  { %v1412_v22 = vmul.f32 %v1408_v63, %v1408_v63  ;;  %v1416_v13 = vsub.f32 %v1292_v37, %v1408_v63  ;;  %v1417_v58 = vsub.f32 %v1294_v47, %v1408_v63  ;;  %v1418_v60 = vsub.f32 %v1369_v53, %v1408_v63 }
 0x4e1   :  { %v1402_v28 = vpop.xlane.xlu0 %1401  ;;  %v1389_v41 = vpop.xlane.xlu1 %1388  ;;  %v1419_v34 = vsub.f32 %v1371_v59, %v1408_v63  ;;  %v2173_v59 = vld [vmem:[#allocation3 + $0x28] sm:$0xff] }
 0x4e2   :  { %v1410_v31 = vmul.f32 0.001953125, %v1402_v28  ;;  %v1409_v49 = vmul.f32 0.001953125, %v1389_v41 }
 0x4e4   :  { %v1414_v6 = vsub.f32 %v1410_v31, %v1412_v22  ;;  %v1413_v25 = vmul.f32 %v1409_v49, %v1409_v49  ;;  %v1420_v39 = vsub.f32 %v3570_v57, %v1409_v49  ;;  %v1421_v3 = vsub.f32 %v1300_v20, %v1409_v49 }
 0x4e5   :  { %v1407_v61 = vpop.xlane.xlu0 %1406  ;;  %v1422_v18 = vsub.f32 %v1375_v38, %v1409_v49  ;;  %v1423_v36 = vsub.f32 %v1377_v32, %v1409_v49 }
 0x4e6   :  { %v1424_v62 = vadd.f32 1e-05, %v1414_v6  ;;  %v1411_v51 = vmul.f32 0.001953125, %v1407_v61 }
 0x4e8   :  { %2164 = vrsqrt.f32 %v1424_v62  ;;  %v1415_v54 = vsub.f32 %v1411_v51, %v1413_v25 }
 0x4ea   :  { %v1425_v10 = vadd.f32 1e-05, %v1415_v54 }
 0x4ec   :  { %2166 = vrsqrt.f32 %v1425_v10 }
 0x4f2   :  { %v2165_v9 = vpop.eup %2164 }
 0x4f3   :  { %v1428_v46 = vmul.f32 %v2165_v9, %v1416_v13  ;;  %v1429_v12 = vmul.f32 %v2165_v9, %v1417_v58  ;;  %v1430_v26 = vmul.f32 %v2165_v9, %v1418_v60  ;;  %v1431_v14 = vmul.f32 %v2165_v9, %v1419_v34 }
 0x4f5   :  { %v1436_v11 = vadd.f32 %v2168_v42, %v1428_v46  ;;  %v1437_v35 = vadd.f32 %v2169_v7, %v1429_v12  ;;  %v1438_v4 = vadd.f32 %v2170_v15, %v1430_v26  ;;  %v1439_v33 = vadd.f32 %v2171_v44, %v1431_v14 }
 0x4f6   :  { %v2167_v30 = vpop.eup %2166 }
 0x4f7   :  { %v1432_v37 = vmul.f32 %v2167_v30, %v1420_v39  ;;  %v1433_v55 = vmul.f32 %v2167_v30, %v1421_v3  ;;  %v1434_v47 = vmul.f32 %v2167_v30, %v1422_v18  ;;  %v1435_v50 = vmul.f32 %v2167_v30, %v1423_v36 }
 0x4f8   :  { %v1444_v21 = vmax.f32 %v1436_v11, 0.0  ;;  %v1445_v53 = vmax.f32 %v1437_v35, 0.0  ;;  %v1446_v1 = vmax.f32 %v1438_v4, 0.0  ;;  %v1447_v57 = vmax.f32 %v1439_v33, 0.0 }
 0x4f9   :  { %v1440_v24 = vadd.f32 %v2172_v45, %v1432_v37  ;;  %v1441_v20 = vadd.f32 %v2173_v59, %v1433_v55  ;;  %v1442_v27 = vadd.f32 %v2174_v16, %v1434_v47  ;;  %v1443_v52 = vadd.f32 %v2175_v0, %v1435_v50 }
 0x4fa   :  { %1452 = vst [vmem:[#allocation12] sm:$0xff] %v1444_v21  ;;  %1453 = vst [vmem:[#allocation12 + $0x8] sm:$0xff] %v1445_v53 }
 0x4fb   :  { %1454 = vst [vmem:[#allocation12 + $0x10] sm:$0xff] %v1446_v1  ;;  %1455 = vst [vmem:[#allocation12 + $0x18] sm:$0xff] %v1447_v57  ;;  %v1448_v56 = vmax.f32 %v1440_v24, 0.0  ;;  %v1449_v19 = vmax.f32 %v1441_v20, 0.0  ;;  %v1450_v23 = vmax.f32 %v1442_v27, 0.0  ;;  %v1451_v38 = vmax.f32 %v1443_v52, 0.0 }
 0x4fd   :  { %1456 = vst [vmem:[#allocation12 + $0x20] sm:$0xff] %v1448_v56  ;;  %1457 = vst [vmem:[#allocation12 + $0x28] sm:$0xff] %v1449_v19 }
 0x4fe   :  { %1458 = vst [vmem:[#allocation12 + $0x30] sm:$0xff] %v1450_v23  ;;  %1459 = vst [vmem:[#allocation12 + $0x38] sm:$0xff] %v1451_v38 }
 0x4ff   :  { %2297 = shalt.err (!%p2294_p2)
}
 0x500   :  { %s2298_s16 = scalar_lea.hbm %s3596_s5, 1024 }
 0x501   :  { %p2299_p3 = scmp.ne.s32.totalorder %s3596_s5, %s2298_s16  ;;  %p2302_p4 = scmp.lt.u32.totalorder %s2298_s16, %s3596_s5 }
 0x503   :  { %p2304_p5 = pnand %p2302_p4, %p2299_p3 }
 0x505   :  { %2307 = shalt.err (!%p2304_p5)
}
 0x506   :  { %1471 = dma.vmem_to_hbm [thread:$0]  %s1466_s12, 1024, %s3596_s5, [#allocation5], %s2318_s30, %s2318_s30, %s2319_s6  }
 0x507   :  { %2314 = dma.done.wait [#allocation5], 1024  }
 0x508   :  { %2315 = vsyncadd [#allocation5], 4294966272 }
 0x509   :  { %1475 = vsyncpa [#allocation4], 1 }
 0x50a   :  { %1476 = vsyncpa [#allocation7], 1 }
 0x50b   :  { %1477 = vsyncpa [#allocation10], 1 }
 0x50c   :  { %1478 = vsyncpa [#allocation5], 1 }

</bundles_post_ra>
